<compile_context>
chip_gen: v7x
topology: tpu7x:2x2x1
jax: 0.10.0
libtpu: 0.0.40
codegen_flags: <defaults>
</compile_context>

<pallas_src>
import functools

import jax
import jax.numpy as jnp
from jax import lax
from jax.experimental import pallas as pl
from jax.experimental.pallas import tpu as pltpu


def _spatial_attention_kernel(w_ref, idx_ref, x_ref, o_ref, sum_ref, max_ref, *,
                              C, KS, PAD, H, W, CT, mask_channel_tail):
    # w_ref    : SMEM (2*KS*KS,) f32   conv weights, 1/C folded into channel 0
    # idx_ref  : VMEM (2, nb, HW) i32  flat column / row index planes (resident)
    # x_ref    : VMEM (nb, CT, HW)     input tile (batch rows x channel tile)
    # o_ref    : VMEM (nb, 1, HW)      output tile
    # sum_ref  : VMEM (nb, HW) f32     running channel sum   (scratch)
    # max_ref  : VMEM (nb, HW) f32     running channel max   (scratch)
    nb, _, HW = x_ref.shape
    c = pl.program_id(1)
    n_c = pl.num_programs(1)

    @pl.when(c == 0)
    def _init():
        sum_ref[...] = jnp.zeros(sum_ref.shape, sum_ref.dtype)
        max_ref[...] = jnp.full(max_ref.shape, -jnp.inf, max_ref.dtype)

    # Whole-block channel reduction (sublane axis) for this channel tile.
    xs = x_ref[...].astype(jnp.float32)                      # (nb, CT, HW)
    if mask_channel_tail:
        ch = lax.broadcasted_iota(jnp.int32, xs.shape, 1) + c * CT
        valid = ch < C
        s_part = jnp.where(valid, xs, 0.0).sum(axis=1)
        m_part = jnp.where(valid, xs, -jnp.inf).max(axis=1)
    else:
        s_part = xs.sum(axis=1)
        m_part = xs.max(axis=1)
    sum_ref[...] = sum_ref[...] + s_part
    max_ref[...] = jnp.maximum(max_ref[...], m_part)

    @pl.when(c == n_c - 1)
    def _finalize():
        col = idx_ref[0]                                     # (nb, HW) i32
        row = idx_ref[1]                                     # (nb, HW) i32
        planes = (sum_ref[...], max_ref[...])  # conv ch 0 = avg (1/C in weights), 1 = max
        acc0 = jnp.zeros((nb, HW), jnp.float32)
        acc1 = jnp.zeros((nb, HW), jnp.float32)
        for c_in, plane in enumerate(planes):
            # KS column-shifted, boundary-masked slabs (XLU lane rolls), built
            # once per conv input channel and reused across all KS row taps.
            v = []
            for kw in range(KS):
                d = kw - PAD
                if d == 0:
                    v.append(plane)
                else:
                    rolled = pltpu.roll(plane, (-d) % HW, 1)
                    cmask = (col < (W - d)) if d > 0 else (col >= (-d))
                    v.append(jnp.where(cmask, rolled, 0.0))
            for kh in range(KS):
                base = (c_in * KS + kh) * KS
                # Two partial accumulators for the tap sum (ILP on no-FMA VALU).
                t0 = w_ref[base] * v[0]
                t1 = w_ref[base + 1] * v[1]
                for kw in range(2, KS, 2):
                    t0 = t0 + w_ref[base + kw] * v[kw]
                for kw in range(3, KS, 2):
                    t1 = t1 + w_ref[base + kw] * v[kw]
                t = t0 + t1
                # Row tap: roll by (kh-PAD)*W lanes + top/bottom "same"-padding mask.
                d = kh - PAD
                if d != 0:
                    rolled = pltpu.roll(t, (-d * W) % HW, 1)
                    rmask = (row < (H - d)) if d > 0 else (row >= (-d))
                    t = jnp.where(rmask, rolled, 0.0)
                if kh % 2 == 0:
                    acc0 = acc0 + t
                else:
                    acc1 = acc1 + t
        out = jax.nn.sigmoid(acc0 + acc1)
        o_ref[:, 0, :] = out.astype(o_ref.dtype)


def spatial_attention(x, weight):
    """x: (N, C, H, W); weight: (1, 2, k, k) f32 (no bias) -> (N, 1, H, W)."""
    N, C, H, W = x.shape
    KS = int(weight.shape[-1])
    PAD = KS // 2
    HW = H * W

    # Fold the 1/C of the channel mean into the avg-channel conv weights.
    chan_scale = jnp.array([1.0 / C, 1.0], jnp.float32).reshape(1, 2, 1, 1)
    w_flat = (weight.astype(jnp.float32) * chan_scale).reshape(-1)   # (2*KS*KS,)

    x_flat = x.reshape(N, C, HW)             # free reshape: lane-dense layout

    # >= 2 batch grid steps whenever N >= 2 (v7x megacore), capped at 8 rows.
    nb = max(1, min(8, pl.cdiv(N, 2)))

    # Generation-aware VMEM budget (~48 MiB on v7x, ~96 MiB on v5e/v6e).
    try:
        vmem_cap = int(getattr(pltpu.get_tpu_info(), "vmem_capacity_bytes", 64 << 20))
    except Exception:  # e.g. tracing off-TPU
        vmem_cap = 64 << 20
    budget = (vmem_cap * 3) // 4

    def _overhead_bytes(rows):
        # double-buffered (rows,1,HW) output block (sublane-padded) + resident
        # (2,rows,HW) i32 index planes + 2x (rows,HW) f32 scratch + slack.
        return (2 * rows * 8 * HW * 4) + (2 * rows * HW * 4) + (2 * rows * HW * 4) + (2 << 20)

    while nb > 1 and _overhead_bytes(nb) + 2 * nb * 8 * HW * 4 > budget:
        nb = max(1, nb // 2)

    # Channel tile: full C if it fits the budget; else a divisor of C that is a
    # multiple of 8; else a multiple of 8 with an in-kernel masked tail.
    ct_max = max(8, (budget - _overhead_bytes(nb)) // (2 * nb * HW * 4))
    if C <= ct_max:
        CT, mask_tail = C, False
    else:
        top = max(8, (min(ct_max, C) // 8) * 8)
        CT, mask_tail = None, False
        for ct in range(top, 7, -8):
            if C % ct == 0:
                CT = ct
                break
        if CT is None:
            CT = top
            mask_tail = (C % CT != 0)

    grid = (pl.cdiv(N, nb), pl.cdiv(C, CT))

    # Flat column / row index planes for the in-kernel boundary masks.
    pos = jnp.arange(HW, dtype=jnp.int32)
    idx = jnp.stack([pos % W, pos // W]).reshape(2, 1, HW)
    idx = jnp.broadcast_to(idx, (2, nb, HW))

    vmem_need = 2 * nb * CT * HW * 4 + _overhead_bytes(nb)
    vmem_limit = int(min(max(vmem_need, 8 << 20), budget))

    kernel = functools.partial(_spatial_attention_kernel, C=C, KS=KS, PAD=PAD,
                               H=H, W=W, CT=CT, mask_channel_tail=mask_tail)

    out_flat = pl.pallas_call(
        kernel,
        out_shape=jax.ShapeDtypeStruct((N, 1, HW), x.dtype),
        grid_spec=pltpu.PrefetchScalarGridSpec(
            num_scalar_prefetch=0,
            grid=grid,
            in_specs=[
                pl.BlockSpec(memory_space=pltpu.MemorySpace.SMEM),   # conv weights
                pl.BlockSpec((2, nb, HW), lambda b, c: (0, 0, 0)),   # col/row planes
                pl.BlockSpec((nb, CT, HW), lambda b, c: (b, c, 0)),  # x tile
            ],
            out_specs=pl.BlockSpec((nb, 1, HW), lambda b, c: (b, 0, 0)),
            scratch_shapes=[
                pltpu.VMEM((nb, HW), jnp.float32),   # running channel sum
                pltpu.VMEM((nb, HW), jnp.float32),   # running channel max
            ],
        ),
        compiler_params=pltpu.CompilerParams(
            dimension_semantics=("parallel", "arbitrary"),
            vmem_limit_bytes=vmem_limit),
        cost_estimate=pl.CostEstimate(
            flops=int(N * HW * (2 * C + 4 * KS * KS)),
            transcendentals=int(N * HW),
            bytes_accessed=int(4 * (N * C * HW + N * HW + 2 * KS * KS + 2 * nb * HW))),
    )(w_flat, idx, x_flat)

    return out_flat.reshape(N, 1, H, W)


def _reference(x, weight):
    """Pure-JAX reference of the PyTorch forward, for a sanity check."""
    pad = weight.shape[-1] // 2
    avg = jnp.mean(x, axis=1, keepdims=True)
    mx = jnp.max(x, axis=1, keepdims=True)
    cat = jnp.concatenate([avg, mx], axis=1)
    conv = jax.lax.conv_general_dilated(
        cat, weight, window_strides=(1, 1),
        padding=((pad, pad), (pad, pad)),
        dimension_numbers=("NCHW", "OIHW", "NCHW"))
    return jax.nn.sigmoid(conv)


if __name__ == "__main__":
    key = jax.random.PRNGKey(0)
    kx, kw = jax.random.split(key)

    N, C, H, W = 2, 4, 16, 16
    KSIZE = 7
    x = jax.random.normal(kx, (N, C, H, W), dtype=jnp.float32)

    # Deterministic conv weight init (kaiming-uniform-like, as nn.Conv2d does).
    fan_in = 2 * KSIZE * KSIZE
    bound = 1.0 / (fan_in ** 0.5)
    weight = jax.random.uniform(kw, (1, 2, KSIZE, KSIZE),
                                minval=-bound, maxval=bound,
                                dtype=jnp.float32)

    out = spatial_attention(x, weight)
    out = jax.block_until_ready(out)

    ref = _reference(x, weight)
    assert out.shape == (N, 1, H, W)
    assert jnp.allclose(out, ref, atol=1e-5, rtol=1e-5)

    print("KERNEL_OK")
</pallas_src>

<mosaic_0001>
module attributes {stable_mosaic.version = 11 : i64} {
  func.func @_spatial_attention_kernel(%arg0: i32, %arg1: i32, %arg2: memref<98xf32, #tpu.memory_space<smem>>, %arg3: memref<2x1x256xi32, #tpu.memory_space<vmem>>, %arg4: memref<1x4x256xf32, #tpu.memory_space<vmem>>, %arg5: memref<1x1x256xf32, #tpu.memory_space<vmem>>, %arg6: memref<1x256xf32, #tpu.memory_space<vmem>>, %arg7: memref<1x256xf32, #tpu.memory_space<vmem>>) attributes {dimension_semantics = [#tpu.dimension_semantics<parallel>, #tpu.dimension_semantics<arbitrary>], iteration_bounds = array<i64: 2, 1>, scalar_prefetch = 0 : i64, scratch_operands = 2 : i64, tpu.core_type = #tpu.core_type<tc>, window_params = [{transform_indices = @transform_0, window_bounds = array<i64: 98>}, {pipeline_mode = #tpu.pipeline_mode<synchronous>, transform_indices = @transform_1, window_bounds = array<i64: 2, 1, 256>}, {transform_indices = @transform_2, window_bounds = array<i64: 1, 4, 256>}, {transform_indices = @transform_3, window_bounds = array<i64: 1, 1, 256>}]} {
    %c0_i32 = arith.constant 0 : i32
    %0 = arith.cmpi eq, %arg1, %c0_i32 : i32
    %1 = arith.extui %0 : i1 to i32
    %c0_i32_0 = arith.constant 0 : i32
    %2 = arith.cmpi ne, %1, %c0_i32_0 : i32
    scf.if %2 {
      %cst_14 = arith.constant 0.000000e+00 : f32
      %15 = vector.broadcast %cst_14 : f32 to vector<1x256xf32>
      %c0_15 = arith.constant 0 : index
      %c0_16 = arith.constant 0 : index
      %16 = vector.load %arg6[%c0_15, %c0_16] : memref<1x256xf32, #tpu.memory_space<vmem>>, vector<1x256xf32>
      tpu.vector_store %arg6[%c0_15, %c0_16], %15 {strides = array<i32>} : memref<1x256xf32, #tpu.memory_space<vmem>>, vector<1x256xf32>,
      %cst_17 = arith.constant 0xFF800000 : f32
      %17 = vector.broadcast %cst_17 : f32 to vector<1x256xf32>
      %c0_18 = arith.constant 0 : index
      %c0_19 = arith.constant 0 : index
      %18 = vector.load %arg7[%c0_18, %c0_19] : memref<1x256xf32, #tpu.memory_space<vmem>>, vector<1x256xf32>
      tpu.vector_store %arg7[%c0_18, %c0_19], %17 {strides = array<i32>} : memref<1x256xf32, #tpu.memory_space<vmem>>, vector<1x256xf32>,
    } else {
    }
    %c0 = arith.constant 0 : index
    %c0_1 = arith.constant 0 : index
    %c0_2 = arith.constant 0 : index
    %3 = vector.load %arg4[%c0, %c0_1, %c0_2] : memref<1x4x256xf32, #tpu.memory_space<vmem>>, vector<1x4x256xf32>
    %cst = arith.constant dense<0.000000e+00> : vector<1x256xf32>
    %4 = vector.multi_reduction <add>, %3, %cst [1] : vector<1x4x256xf32> to vector<1x256xf32>
    %cst_3 = arith.constant dense<0xFF800000> : vector<1x256xf32>
    %5 = vector.multi_reduction <maximumf>, %3, %cst_3 [1] : vector<1x4x256xf32> to vector<1x256xf32>
    %c0_4 = arith.constant 0 : index
    %c0_5 = arith.constant 0 : index
    %6 = vector.load %arg6[%c0_4, %c0_5] : memref<1x256xf32, #tpu.memory_space<vmem>>, vector<1x256xf32>
    %7 = arith.addf %6, %4 : vector<1x256xf32>
    %c0_6 = arith.constant 0 : index
    %c0_7 = arith.constant 0 : index
    %8 = vector.load %arg6[%c0_6, %c0_7] : memref<1x256xf32, #tpu.memory_space<vmem>>, vector<1x256xf32>
    tpu.vector_store %arg6[%c0_6, %c0_7], %7 {strides = array<i32>} : memref<1x256xf32, #tpu.memory_space<vmem>>, vector<1x256xf32>,
    %c0_8 = arith.constant 0 : index
    %c0_9 = arith.constant 0 : index
    %9 = vector.load %arg7[%c0_8, %c0_9] : memref<1x256xf32, #tpu.memory_space<vmem>>, vector<1x256xf32>
    %10 = arith.maximumf %9, %5 : vector<1x256xf32>
    %c0_10 = arith.constant 0 : index
    %c0_11 = arith.constant 0 : index
    %11 = vector.load %arg7[%c0_10, %c0_11] : memref<1x256xf32, #tpu.memory_space<vmem>>, vector<1x256xf32>
    tpu.vector_store %arg7[%c0_10, %c0_11], %10 {strides = array<i32>} : memref<1x256xf32, #tpu.memory_space<vmem>>, vector<1x256xf32>,
    %c0_i32_12 = arith.constant 0 : i32
    %12 = arith.cmpi eq, %arg1, %c0_i32_12 : i32
    %13 = arith.extui %12 : i1 to i32
    %c0_i32_13 = arith.constant 0 : i32
    %14 = arith.cmpi ne, %13, %c0_i32_13 : i32
    scf.if %14 {
      %c0_14 = arith.constant 0 : index
      %c0_15 = arith.constant 0 : index
      %c0_16 = arith.constant 0 : index
      %15 = vector.load %arg3[%c0_14, %c0_15, %c0_16] : memref<2x1x256xi32, #tpu.memory_space<vmem>>, vector<1x1x256xi32>
      %16 = vector.shape_cast %15 : vector<1x1x256xi32> to vector<1x256xi32>
      %c1 = arith.constant 1 : index
      %c0_17 = arith.constant 0 : index
      %c0_18 = arith.constant 0 : index
      %17 = vector.load %arg3[%c1, %c0_17, %c0_18] : memref<2x1x256xi32, #tpu.memory_space<vmem>>, vector<1x1x256xi32>
      %18 = vector.shape_cast %17 : vector<1x1x256xi32> to vector<1x256xi32>
      %c0_19 = arith.constant 0 : index
      %c0_20 = arith.constant 0 : index
      %19 = vector.load %arg6[%c0_19, %c0_20] : memref<1x256xf32, #tpu.memory_space<vmem>>, vector<1x256xf32>
      %c0_21 = arith.constant 0 : index
      %c0_22 = arith.constant 0 : index
      %20 = vector.load %arg7[%c0_21, %c0_22] : memref<1x256xf32, #tpu.memory_space<vmem>>, vector<1x256xf32>
      %cst_23 = arith.constant 0.000000e+00 : f32
      %21 = vector.broadcast %cst_23 : f32 to vector<1x256xf32>
      %cst_24 = arith.constant 0.000000e+00 : f32
      %22 = vector.broadcast %cst_24 : f32 to vector<1x256xf32>
      %c3_i32 = arith.constant 3 : i32
      %23 = tpu.dynamic_rotate %19 by %c3_i32 dim 1 : vector<1x256xf32>, i32 -> vector<1x256xf32>
      %c3_i32_25 = arith.constant 3 : i32
      %24 = vector.broadcast %c3_i32_25 : i32 to vector<1x256xi32>
      %25 = arith.cmpi sge, %16, %24 : vector<1x256xi32>
      %cst_26 = arith.constant 0.000000e+00 : f32
      %26 = vector.broadcast %cst_26 : f32 to vector<1x256xf32>
      %27 = arith.select %25, %23, %26 : vector<1x256xi1>, vector<1x256xf32>
      %c2_i32 = arith.constant 2 : i32
      %28 = tpu.dynamic_rotate %19 by %c2_i32 dim 1 : vector<1x256xf32>, i32 -> vector<1x256xf32>
      %c2_i32_27 = arith.constant 2 : i32
      %29 = vector.broadcast %c2_i32_27 : i32 to vector<1x256xi32>
      %30 = arith.cmpi sge, %16, %29 : vector<1x256xi32>
      %cst_28 = arith.constant 0.000000e+00 : f32
      %31 = vector.broadcast %cst_28 : f32 to vector<1x256xf32>
      %32 = arith.select %30, %28, %31 : vector<1x256xi1>, vector<1x256xf32>
      %c1_i32 = arith.constant 1 : i32
      %33 = tpu.dynamic_rotate %19 by %c1_i32 dim 1 : vector<1x256xf32>, i32 -> vector<1x256xf32>
      %c1_i32_29 = arith.constant 1 : i32
      %34 = vector.broadcast %c1_i32_29 : i32 to vector<1x256xi32>
      %35 = arith.cmpi sge, %16, %34 : vector<1x256xi32>
      %cst_30 = arith.constant 0.000000e+00 : f32
      %36 = vector.broadcast %cst_30 : f32 to vector<1x256xf32>
      %37 = arith.select %35, %33, %36 : vector<1x256xi1>, vector<1x256xf32>
      %c255_i32 = arith.constant 255 : i32
      %38 = tpu.dynamic_rotate %19 by %c255_i32 dim 1 : vector<1x256xf32>, i32 -> vector<1x256xf32>
      %c15_i32 = arith.constant 15 : i32
      %39 = vector.broadcast %c15_i32 : i32 to vector<1x256xi32>
      %40 = arith.cmpi slt, %16, %39 : vector<1x256xi32>
      %cst_31 = arith.constant 0.000000e+00 : f32
      %41 = vector.broadcast %cst_31 : f32 to vector<1x256xf32>
      %42 = arith.select %40, %38, %41 : vector<1x256xi1>, vector<1x256xf32>
      %c254_i32 = arith.constant 254 : i32
      %43 = tpu.dynamic_rotate %19 by %c254_i32 dim 1 : vector<1x256xf32>, i32 -> vector<1x256xf32>
      %c14_i32 = arith.constant 14 : i32
      %44 = vector.broadcast %c14_i32 : i32 to vector<1x256xi32>
      %45 = arith.cmpi slt, %16, %44 : vector<1x256xi32>
      %cst_32 = arith.constant 0.000000e+00 : f32
      %46 = vector.broadcast %cst_32 : f32 to vector<1x256xf32>
      %47 = arith.select %45, %43, %46 : vector<1x256xi1>, vector<1x256xf32>
      %c253_i32 = arith.constant 253 : i32
      %48 = tpu.dynamic_rotate %19 by %c253_i32 dim 1 : vector<1x256xf32>, i32 -> vector<1x256xf32>
      %c13_i32 = arith.constant 13 : i32
      %49 = vector.broadcast %c13_i32 : i32 to vector<1x256xi32>
      %50 = arith.cmpi slt, %16, %49 : vector<1x256xi32>
      %cst_33 = arith.constant 0.000000e+00 : f32
      %51 = vector.broadcast %cst_33 : f32 to vector<1x256xf32>
      %52 = arith.select %50, %48, %51 : vector<1x256xi1>, vector<1x256xf32>
      %c0_34 = arith.constant 0 : index
      %53 = memref.load %arg2[%c0_34] : memref<98xf32, #tpu.memory_space<smem>>
      %54 = vector.broadcast %53 : f32 to vector<1x256xf32>
      %55 = arith.mulf %54, %27 : vector<1x256xf32>
      %c1_35 = arith.constant 1 : index
      %56 = memref.load %arg2[%c1_35] : memref<98xf32, #tpu.memory_space<smem>>
      %57 = vector.broadcast %56 : f32 to vector<1x256xf32>
      %58 = arith.mulf %57, %32 : vector<1x256xf32>
      %c2 = arith.constant 2 : index
      %59 = memref.load %arg2[%c2] : memref<98xf32, #tpu.memory_space<smem>>
      %60 = vector.broadcast %59 : f32 to vector<1x256xf32>
      %61 = arith.mulf %60, %37 : vector<1x256xf32>
      %62 = arith.addf %55, %61 : vector<1x256xf32>
      %c4 = arith.constant 4 : index
      %63 = memref.load %arg2[%c4] : memref<98xf32, #tpu.memory_space<smem>>
      %64 = vector.broadcast %63 : f32 to vector<1x256xf32>
      %65 = arith.mulf %64, %42 : vector<1x256xf32>
      %66 = arith.addf %62, %65 : vector<1x256xf32>
      %c6 = arith.constant 6 : index
      %67 = memref.load %arg2[%c6] : memref<98xf32, #tpu.memory_space<smem>>
      %68 = vector.broadcast %67 : f32 to vector<1x256xf32>
      %69 = arith.mulf %68, %52 : vector<1x256xf32>
      %70 = arith.addf %66, %69 : vector<1x256xf32>
      %c3 = arith.constant 3 : index
      %71 = memref.load %arg2[%c3] : memref<98xf32, #tpu.memory_space<smem>>
      %72 = vector.broadcast %71 : f32 to vector<1x256xf32>
      %73 = arith.mulf %72, %19 : vector<1x256xf32>
      %74 = arith.addf %58, %73 : vector<1x256xf32>
      %c5 = arith.constant 5 : index
      %75 = memref.load %arg2[%c5] : memref<98xf32, #tpu.memory_space<smem>>
      %76 = vector.broadcast %75 : f32 to vector<1x256xf32>
      %77 = arith.mulf %76, %47 : vector<1x256xf32>
      %78 = arith.addf %74, %77 : vector<1x256xf32>
      %79 = arith.addf %70, %78 : vector<1x256xf32>
      %c48_i32 = arith.constant 48 : i32
      %80 = tpu.dynamic_rotate %79 by %c48_i32 dim 1 : vector<1x256xf32>, i32 -> vector<1x256xf32>
      %c3_i32_36 = arith.constant 3 : i32
      %81 = vector.broadcast %c3_i32_36 : i32 to vector<1x256xi32>
      %82 = arith.cmpi sge, %18, %81 : vector<1x256xi32>
      %cst_37 = arith.constant 0.000000e+00 : f32
      %83 = vector.broadcast %cst_37 : f32 to vector<1x256xf32>
      %84 = arith.select %82, %80, %83 : vector<1x256xi1>, vector<1x256xf32>
      %85 = arith.addf %21, %84 : vector<1x256xf32>
      %c7 = arith.constant 7 : index
      %86 = memref.load %arg2[%c7] : memref<98xf32, #tpu.memory_space<smem>>
      %87 = vector.broadcast %86 : f32 to vector<1x256xf32>
      %88 = arith.mulf %87, %27 : vector<1x256xf32>
      %c8 = arith.constant 8 : index
      %89 = memref.load %arg2[%c8] : memref<98xf32, #tpu.memory_space<smem>>
      %90 = vector.broadcast %89 : f32 to vector<1x256xf32>
      %91 = arith.mulf %90, %32 : vector<1x256xf32>
      %c9 = arith.constant 9 : index
      %92 = memref.load %arg2[%c9] : memref<98xf32, #tpu.memory_space<smem>>
      %93 = vector.broadcast %92 : f32 to vector<1x256xf32>
      %94 = arith.mulf %93, %37 : vector<1x256xf32>
      %95 = arith.addf %88, %94 : vector<1x256xf32>
      %c11 = arith.constant 11 : index
      %96 = memref.load %arg2[%c11] : memref<98xf32, #tpu.memory_space<smem>>
      %97 = vector.broadcast %96 : f32 to vector<1x256xf32>
      %98 = arith.mulf %97, %42 : vector<1x256xf32>
      %99 = arith.addf %95, %98 : vector<1x256xf32>
      %c13 = arith.constant 13 : index
      %100 = memref.load %arg2[%c13] : memref<98xf32, #tpu.memory_space<smem>>
      %101 = vector.broadcast %100 : f32 to vector<1x256xf32>
      %102 = arith.mulf %101, %52 : vector<1x256xf32>
      %103 = arith.addf %99, %102 : vector<1x256xf32>
      %c10 = arith.constant 10 : index
      %104 = memref.load %arg2[%c10] : memref<98xf32, #tpu.memory_space<smem>>
      %105 = vector.broadcast %104 : f32 to vector<1x256xf32>
      %106 = arith.mulf %105, %19 : vector<1x256xf32>
      %107 = arith.addf %91, %106 : vector<1x256xf32>
      %c12 = arith.constant 12 : index
      %108 = memref.load %arg2[%c12] : memref<98xf32, #tpu.memory_space<smem>>
      %109 = vector.broadcast %108 : f32 to vector<1x256xf32>
      %110 = arith.mulf %109, %47 : vector<1x256xf32>
      %111 = arith.addf %107, %110 : vector<1x256xf32>
      %112 = arith.addf %103, %111 : vector<1x256xf32>
      %c32_i32 = arith.constant 32 : i32
      %113 = tpu.dynamic_rotate %112 by %c32_i32 dim 1 : vector<1x256xf32>, i32 -> vector<1x256xf32>
      %c2_i32_38 = arith.constant 2 : i32
      %114 = vector.broadcast %c2_i32_38 : i32 to vector<1x256xi32>
      %115 = arith.cmpi sge, %18, %114 : vector<1x256xi32>
      %cst_39 = arith.constant 0.000000e+00 : f32
      %116 = vector.broadcast %cst_39 : f32 to vector<1x256xf32>
      %117 = arith.select %115, %113, %116 : vector<1x256xi1>, vector<1x256xf32>
      %118 = arith.addf %22, %117 : vector<1x256xf32>
      %c14 = arith.constant 14 : index
      %119 = memref.load %arg2[%c14] : memref<98xf32, #tpu.memory_space<smem>>
      %120 = vector.broadcast %119 : f32 to vector<1x256xf32>
      %121 = arith.mulf %120, %27 : vector<1x256xf32>
      %c15 = arith.constant 15 : index
      %122 = memref.load %arg2[%c15] : memref<98xf32, #tpu.memory_space<smem>>
      %123 = vector.broadcast %122 : f32 to vector<1x256xf32>
      %124 = arith.mulf %123, %32 : vector<1x256xf32>
      %c16 = arith.constant 16 : index
      %125 = memref.load %arg2[%c16] : memref<98xf32, #tpu.memory_space<smem>>
      %126 = vector.broadcast %125 : f32 to vector<1x256xf32>
      %127 = arith.mulf %126, %37 : vector<1x256xf32>
      %128 = arith.addf %121, %127 : vector<1x256xf32>
      %c18 = arith.constant 18 : index
      %129 = memref.load %arg2[%c18] : memref<98xf32, #tpu.memory_space<smem>>
      %130 = vector.broadcast %129 : f32 to vector<1x256xf32>
      %131 = arith.mulf %130, %42 : vector<1x256xf32>
      %132 = arith.addf %128, %131 : vector<1x256xf32>
      %c20 = arith.constant 20 : index
      %133 = memref.load %arg2[%c20] : memref<98xf32, #tpu.memory_space<smem>>
      %134 = vector.broadcast %133 : f32 to vector<1x256xf32>
      %135 = arith.mulf %134, %52 : vector<1x256xf32>
      %136 = arith.addf %132, %135 : vector<1x256xf32>
      %c17 = arith.constant 17 : index
      %137 = memref.load %arg2[%c17] : memref<98xf32, #tpu.memory_space<smem>>
      %138 = vector.broadcast %137 : f32 to vector<1x256xf32>
      %139 = arith.mulf %138, %19 : vector<1x256xf32>
      %140 = arith.addf %124, %139 : vector<1x256xf32>
      %c19 = arith.constant 19 : index
      %141 = memref.load %arg2[%c19] : memref<98xf32, #tpu.memory_space<smem>>
      %142 = vector.broadcast %141 : f32 to vector<1x256xf32>
      %143 = arith.mulf %142, %47 : vector<1x256xf32>
      %144 = arith.addf %140, %143 : vector<1x256xf32>
      %145 = arith.addf %136, %144 : vector<1x256xf32>
      %c16_i32 = arith.constant 16 : i32
      %146 = tpu.dynamic_rotate %145 by %c16_i32 dim 1 : vector<1x256xf32>, i32 -> vector<1x256xf32>
      %c1_i32_40 = arith.constant 1 : i32
      %147 = vector.broadcast %c1_i32_40 : i32 to vector<1x256xi32>
      %148 = arith.cmpi sge, %18, %147 : vector<1x256xi32>
      %cst_41 = arith.constant 0.000000e+00 : f32
      %149 = vector.broadcast %cst_41 : f32 to vector<1x256xf32>
      %150 = arith.select %148, %146, %149 : vector<1x256xi1>, vector<1x256xf32>
      %151 = arith.addf %85, %150 : vector<1x256xf32>
      %c21 = arith.constant 21 : index
      %152 = memref.load %arg2[%c21] : memref<98xf32, #tpu.memory_space<smem>>
      %153 = vector.broadcast %152 : f32 to vector<1x256xf32>
      %154 = arith.mulf %153, %27 : vector<1x256xf32>
      %c22 = arith.constant 22 : index
      %155 = memref.load %arg2[%c22] : memref<98xf32, #tpu.memory_space<smem>>
      %156 = vector.broadcast %155 : f32 to vector<1x256xf32>
      %157 = arith.mulf %156, %32 : vector<1x256xf32>
      %c23 = arith.constant 23 : index
      %158 = memref.load %arg2[%c23] : memref<98xf32, #tpu.memory_space<smem>>
      %159 = vector.broadcast %158 : f32 to vector<1x256xf32>
      %160 = arith.mulf %159, %37 : vector<1x256xf32>
      %161 = arith.addf %154, %160 : vector<1x256xf32>
      %c25 = arith.constant 25 : index
      %162 = memref.load %arg2[%c25] : memref<98xf32, #tpu.memory_space<smem>>
      %163 = vector.broadcast %162 : f32 to vector<1x256xf32>
      %164 = arith.mulf %163, %42 : vector<1x256xf32>
      %165 = arith.addf %161, %164 : vector<1x256xf32>
      %c27 = arith.constant 27 : index
      %166 = memref.load %arg2[%c27] : memref<98xf32, #tpu.memory_space<smem>>
      %167 = vector.broadcast %166 : f32 to vector<1x256xf32>
      %168 = arith.mulf %167, %52 : vector<1x256xf32>
      %169 = arith.addf %165, %168 : vector<1x256xf32>
      %c24 = arith.constant 24 : index
      %170 = memref.load %arg2[%c24] : memref<98xf32, #tpu.memory_space<smem>>
      %171 = vector.broadcast %170 : f32 to vector<1x256xf32>
      %172 = arith.mulf %171, %19 : vector<1x256xf32>
      %173 = arith.addf %157, %172 : vector<1x256xf32>
      %c26 = arith.constant 26 : index
      %174 = memref.load %arg2[%c26] : memref<98xf32, #tpu.memory_space<smem>>
      %175 = vector.broadcast %174 : f32 to vector<1x256xf32>
      %176 = arith.mulf %175, %47 : vector<1x256xf32>
      %177 = arith.addf %173, %176 : vector<1x256xf32>
      %178 = arith.addf %169, %177 : vector<1x256xf32>
      %179 = arith.addf %118, %178 : vector<1x256xf32>
      %c28 = arith.constant 28 : index
      %180 = memref.load %arg2[%c28] : memref<98xf32, #tpu.memory_space<smem>>
      %181 = vector.broadcast %180 : f32 to vector<1x256xf32>
      %182 = arith.mulf %181, %27 : vector<1x256xf32>
      %c29 = arith.constant 29 : index
      %183 = memref.load %arg2[%c29] : memref<98xf32, #tpu.memory_space<smem>>
      %184 = vector.broadcast %183 : f32 to vector<1x256xf32>
      %185 = arith.mulf %184, %32 : vector<1x256xf32>
      %c30 = arith.constant 30 : index
      %186 = memref.load %arg2[%c30] : memref<98xf32, #tpu.memory_space<smem>>
      %187 = vector.broadcast %186 : f32 to vector<1x256xf32>
      %188 = arith.mulf %187, %37 : vector<1x256xf32>
      %189 = arith.addf %182, %188 : vector<1x256xf32>
      %c32 = arith.constant 32 : index
      %190 = memref.load %arg2[%c32] : memref<98xf32, #tpu.memory_space<smem>>
      %191 = vector.broadcast %190 : f32 to vector<1x256xf32>
      %192 = arith.mulf %191, %42 : vector<1x256xf32>
      %193 = arith.addf %189, %192 : vector<1x256xf32>
      %c34 = arith.constant 34 : index
      %194 = memref.load %arg2[%c34] : memref<98xf32, #tpu.memory_space<smem>>
      %195 = vector.broadcast %194 : f32 to vector<1x256xf32>
      %196 = arith.mulf %195, %52 : vector<1x256xf32>
      %197 = arith.addf %193, %196 : vector<1x256xf32>
      %c31 = arith.constant 31 : index
      %198 = memref.load %arg2[%c31] : memref<98xf32, #tpu.memory_space<smem>>
      %199 = vector.broadcast %198 : f32 to vector<1x256xf32>
      %200 = arith.mulf %199, %19 : vector<1x256xf32>
      %201 = arith.addf %185, %200 : vector<1x256xf32>
      %c33 = arith.constant 33 : index
      %202 = memref.load %arg2[%c33] : memref<98xf32, #tpu.memory_space<smem>>
      %203 = vector.broadcast %202 : f32 to vector<1x256xf32>
      %204 = arith.mulf %203, %47 : vector<1x256xf32>
      %205 = arith.addf %201, %204 : vector<1x256xf32>
      %206 = arith.addf %197, %205 : vector<1x256xf32>
      %c240_i32 = arith.constant 240 : i32
      %207 = tpu.dynamic_rotate %206 by %c240_i32 dim 1 : vector<1x256xf32>, i32 -> vector<1x256xf32>
      %c15_i32_42 = arith.constant 15 : i32
      %208 = vector.broadcast %c15_i32_42 : i32 to vector<1x256xi32>
      %209 = arith.cmpi slt, %18, %208 : vector<1x256xi32>
      %cst_43 = arith.constant 0.000000e+00 : f32
      %210 = vector.broadcast %cst_43 : f32 to vector<1x256xf32>
      %211 = arith.select %209, %207, %210 : vector<1x256xi1>, vector<1x256xf32>
      %212 = arith.addf %151, %211 : vector<1x256xf32>
      %c35 = arith.constant 35 : index
      %213 = memref.load %arg2[%c35] : memref<98xf32, #tpu.memory_space<smem>>
      %214 = vector.broadcast %213 : f32 to vector<1x256xf32>
      %215 = arith.mulf %214, %27 : vector<1x256xf32>
      %c36 = arith.constant 36 : index
      %216 = memref.load %arg2[%c36] : memref<98xf32, #tpu.memory_space<smem>>
      %217 = vector.broadcast %216 : f32 to vector<1x256xf32>
      %218 = arith.mulf %217, %32 : vector<1x256xf32>
      %c37 = arith.constant 37 : index
      %219 = memref.load %arg2[%c37] : memref<98xf32, #tpu.memory_space<smem>>
      %220 = vector.broadcast %219 : f32 to vector<1x256xf32>
      %221 = arith.mulf %220, %37 : vector<1x256xf32>
      %222 = arith.addf %215, %221 : vector<1x256xf32>
      %c39 = arith.constant 39 : index
      %223 = memref.load %arg2[%c39] : memref<98xf32, #tpu.memory_space<smem>>
      %224 = vector.broadcast %223 : f32 to vector<1x256xf32>
      %225 = arith.mulf %224, %42 : vector<1x256xf32>
      %226 = arith.addf %222, %225 : vector<1x256xf32>
      %c41 = arith.constant 41 : index
      %227 = memref.load %arg2[%c41] : memref<98xf32, #tpu.memory_space<smem>>
      %228 = vector.broadcast %227 : f32 to vector<1x256xf32>
      %229 = arith.mulf %228, %52 : vector<1x256xf32>
      %230 = arith.addf %226, %229 : vector<1x256xf32>
      %c38 = arith.constant 38 : index
      %231 = memref.load %arg2[%c38] : memref<98xf32, #tpu.memory_space<smem>>
      %232 = vector.broadcast %231 : f32 to vector<1x256xf32>
      %233 = arith.mulf %232, %19 : vector<1x256xf32>
      %234 = arith.addf %218, %233 : vector<1x256xf32>
      %c40 = arith.constant 40 : index
      %235 = memref.load %arg2[%c40] : memref<98xf32, #tpu.memory_space<smem>>
      %236 = vector.broadcast %235 : f32 to vector<1x256xf32>
      %237 = arith.mulf %236, %47 : vector<1x256xf32>
      %238 = arith.addf %234, %237 : vector<1x256xf32>
      %239 = arith.addf %230, %238 : vector<1x256xf32>
      %c224_i32 = arith.constant 224 : i32
      %240 = tpu.dynamic_rotate %239 by %c224_i32 dim 1 : vector<1x256xf32>, i32 -> vector<1x256xf32>
      %c14_i32_44 = arith.constant 14 : i32
      %241 = vector.broadcast %c14_i32_44 : i32 to vector<1x256xi32>
      %242 = arith.cmpi slt, %18, %241 : vector<1x256xi32>
      %cst_45 = arith.constant 0.000000e+00 : f32
      %243 = vector.broadcast %cst_45 : f32 to vector<1x256xf32>
      %244 = arith.select %242, %240, %243 : vector<1x256xi1>, vector<1x256xf32>
      %245 = arith.addf %179, %244 : vector<1x256xf32>
      %c42 = arith.constant 42 : index
      %246 = memref.load %arg2[%c42] : memref<98xf32, #tpu.memory_space<smem>>
      %247 = vector.broadcast %246 : f32 to vector<1x256xf32>
      %248 = arith.mulf %247, %27 : vector<1x256xf32>
      %c43 = arith.constant 43 : index
      %249 = memref.load %arg2[%c43] : memref<98xf32, #tpu.memory_space<smem>>
      %250 = vector.broadcast %249 : f32 to vector<1x256xf32>
      %251 = arith.mulf %250, %32 : vector<1x256xf32>
      %c44 = arith.constant 44 : index
      %252 = memref.load %arg2[%c44] : memref<98xf32, #tpu.memory_space<smem>>
      %253 = vector.broadcast %252 : f32 to vector<1x256xf32>
      %254 = arith.mulf %253, %37 : vector<1x256xf32>
      %255 = arith.addf %248, %254 : vector<1x256xf32>
      %c46 = arith.constant 46 : index
      %256 = memref.load %arg2[%c46] : memref<98xf32, #tpu.memory_space<smem>>
      %257 = vector.broadcast %256 : f32 to vector<1x256xf32>
      %258 = arith.mulf %257, %42 : vector<1x256xf32>
      %259 = arith.addf %255, %258 : vector<1x256xf32>
      %c48 = arith.constant 48 : index
      %260 = memref.load %arg2[%c48] : memref<98xf32, #tpu.memory_space<smem>>
      %261 = vector.broadcast %260 : f32 to vector<1x256xf32>
      %262 = arith.mulf %261, %52 : vector<1x256xf32>
      %263 = arith.addf %259, %262 : vector<1x256xf32>
      %c45 = arith.constant 45 : index
      %264 = memref.load %arg2[%c45] : memref<98xf32, #tpu.memory_space<smem>>
      %265 = vector.broadcast %264 : f32 to vector<1x256xf32>
      %266 = arith.mulf %265, %19 : vector<1x256xf32>
      %267 = arith.addf %251, %266 : vector<1x256xf32>
      %c47 = arith.constant 47 : index
      %268 = memref.load %arg2[%c47] : memref<98xf32, #tpu.memory_space<smem>>
      %269 = vector.broadcast %268 : f32 to vector<1x256xf32>
      %270 = arith.mulf %269, %47 : vector<1x256xf32>
      %271 = arith.addf %267, %270 : vector<1x256xf32>
      %272 = arith.addf %263, %271 : vector<1x256xf32>
      %c208_i32 = arith.constant 208 : i32
      %273 = tpu.dynamic_rotate %272 by %c208_i32 dim 1 : vector<1x256xf32>, i32 -> vector<1x256xf32>
      %c13_i32_46 = arith.constant 13 : i32
      %274 = vector.broadcast %c13_i32_46 : i32 to vector<1x256xi32>
      %275 = arith.cmpi slt, %18, %274 : vector<1x256xi32>
      %cst_47 = arith.constant 0.000000e+00 : f32
      %276 = vector.broadcast %cst_47 : f32 to vector<1x256xf32>
      %277 = arith.select %275, %273, %276 : vector<1x256xi1>, vector<1x256xf32>
      %278 = arith.addf %212, %277 : vector<1x256xf32>
      %c3_i32_48 = arith.constant 3 : i32
      %279 = tpu.dynamic_rotate %20 by %c3_i32_48 dim 1 : vector<1x256xf32>, i32 -> vector<1x256xf32>
      %c3_i32_49 = arith.constant 3 : i32
      %280 = vector.broadcast %c3_i32_49 : i32 to vector<1x256xi32>
      %281 = arith.cmpi sge, %16, %280 : vector<1x256xi32>
      %cst_50 = arith.constant 0.000000e+00 : f32
      %282 = vector.broadcast %cst_50 : f32 to vector<1x256xf32>
      %283 = arith.select %281, %279, %282 : vector<1x256xi1>, vector<1x256xf32>
      %c2_i32_51 = arith.constant 2 : i32
      %284 = tpu.dynamic_rotate %20 by %c2_i32_51 dim 1 : vector<1x256xf32>, i32 -> vector<1x256xf32>
      %c2_i32_52 = arith.constant 2 : i32
      %285 = vector.broadcast %c2_i32_52 : i32 to vector<1x256xi32>
      %286 = arith.cmpi sge, %16, %285 : vector<1x256xi32>
      %cst_53 = arith.constant 0.000000e+00 : f32
      %287 = vector.broadcast %cst_53 : f32 to vector<1x256xf32>
      %288 = arith.select %286, %284, %287 : vector<1x256xi1>, vector<1x256xf32>
      %c1_i32_54 = arith.constant 1 : i32
      %289 = tpu.dynamic_rotate %20 by %c1_i32_54 dim 1 : vector<1x256xf32>, i32 -> vector<1x256xf32>
      %c1_i32_55 = arith.constant 1 : i32
      %290 = vector.broadcast %c1_i32_55 : i32 to vector<1x256xi32>
      %291 = arith.cmpi sge, %16, %290 : vector<1x256xi32>
      %cst_56 = arith.constant 0.000000e+00 : f32
      %292 = vector.broadcast %cst_56 : f32 to vector<1x256xf32>
      %293 = arith.select %291, %289, %292 : vector<1x256xi1>, vector<1x256xf32>
      %c255_i32_57 = arith.constant 255 : i32
      %294 = tpu.dynamic_rotate %20 by %c255_i32_57 dim 1 : vector<1x256xf32>, i32 -> vector<1x256xf32>
      %c15_i32_58 = arith.constant 15 : i32
      %295 = vector.broadcast %c15_i32_58 : i32 to vector<1x256xi32>
      %296 = arith.cmpi slt, %16, %295 : vector<1x256xi32>
      %cst_59 = arith.constant 0.000000e+00 : f32
      %297 = vector.broadcast %cst_59 : f32 to vector<1x256xf32>
      %298 = arith.select %296, %294, %297 : vector<1x256xi1>, vector<1x256xf32>
      %c254_i32_60 = arith.constant 254 : i32
      %299 = tpu.dynamic_rotate %20 by %c254_i32_60 dim 1 : vector<1x256xf32>, i32 -> vector<1x256xf32>
      %c14_i32_61 = arith.constant 14 : i32
      %300 = vector.broadcast %c14_i32_61 : i32 to vector<1x256xi32>
      %301 = arith.cmpi slt, %16, %300 : vector<1x256xi32>
      %cst_62 = arith.constant 0.000000e+00 : f32
      %302 = vector.broadcast %cst_62 : f32 to vector<1x256xf32>
      %303 = arith.select %301, %299, %302 : vector<1x256xi1>, vector<1x256xf32>
      %c253_i32_63 = arith.constant 253 : i32
      %304 = tpu.dynamic_rotate %20 by %c253_i32_63 dim 1 : vector<1x256xf32>, i32 -> vector<1x256xf32>
      %c13_i32_64 = arith.constant 13 : i32
      %305 = vector.broadcast %c13_i32_64 : i32 to vector<1x256xi32>
      %306 = arith.cmpi slt, %16, %305 : vector<1x256xi32>
      %cst_65 = arith.constant 0.000000e+00 : f32
      %307 = vector.broadcast %cst_65 : f32 to vector<1x256xf32>
      %308 = arith.select %306, %304, %307 : vector<1x256xi1>, vector<1x256xf32>
      %c49 = arith.constant 49 : index
      %309 = memref.load %arg2[%c49] : memref<98xf32, #tpu.memory_space<smem>>
      %310 = vector.broadcast %309 : f32 to vector<1x256xf32>
      %311 = arith.mulf %310, %283 : vector<1x256xf32>
      %c50 = arith.constant 50 : index
      %312 = memref.load %arg2[%c50] : memref<98xf32, #tpu.memory_space<smem>>
      %313 = vector.broadcast %312 : f32 to vector<1x256xf32>
      %314 = arith.mulf %313, %288 : vector<1x256xf32>
      %c51 = arith.constant 51 : index
      %315 = memref.load %arg2[%c51] : memref<98xf32, #tpu.memory_space<smem>>
      %316 = vector.broadcast %315 : f32 to vector<1x256xf32>
      %317 = arith.mulf %316, %293 : vector<1x256xf32>
      %318 = arith.addf %311, %317 : vector<1x256xf32>
      %c53 = arith.constant 53 : index
      %319 = memref.load %arg2[%c53] : memref<98xf32, #tpu.memory_space<smem>>
      %320 = vector.broadcast %319 : f32 to vector<1x256xf32>
      %321 = arith.mulf %320, %298 : vector<1x256xf32>
      %322 = arith.addf %318, %321 : vector<1x256xf32>
      %c55 = arith.constant 55 : index
      %323 = memref.load %arg2[%c55] : memref<98xf32, #tpu.memory_space<smem>>
      %324 = vector.broadcast %323 : f32 to vector<1x256xf32>
      %325 = arith.mulf %324, %308 : vector<1x256xf32>
      %326 = arith.addf %322, %325 : vector<1x256xf32>
      %c52 = arith.constant 52 : index
      %327 = memref.load %arg2[%c52] : memref<98xf32, #tpu.memory_space<smem>>
      %328 = vector.broadcast %327 : f32 to vector<1x256xf32>
      %329 = arith.mulf %328, %20 : vector<1x256xf32>
      %330 = arith.addf %314, %329 : vector<1x256xf32>
      %c54 = arith.constant 54 : index
      %331 = memref.load %arg2[%c54] : memref<98xf32, #tpu.memory_space<smem>>
      %332 = vector.broadcast %331 : f32 to vector<1x256xf32>
      %333 = arith.mulf %332, %303 : vector<1x256xf32>
      %334 = arith.addf %330, %333 : vector<1x256xf32>
      %335 = arith.addf %326, %334 : vector<1x256xf32>
      %c48_i32_66 = arith.constant 48 : i32
      %336 = tpu.dynamic_rotate %335 by %c48_i32_66 dim 1 : vector<1x256xf32>, i32 -> vector<1x256xf32>
      %c3_i32_67 = arith.constant 3 : i32
      %337 = vector.broadcast %c3_i32_67 : i32 to vector<1x256xi32>
      %338 = arith.cmpi sge, %18, %337 : vector<1x256xi32>
      %cst_68 = arith.constant 0.000000e+00 : f32
      %339 = vector.broadcast %cst_68 : f32 to vector<1x256xf32>
      %340 = arith.select %338, %336, %339 : vector<1x256xi1>, vector<1x256xf32>
      %341 = arith.addf %278, %340 : vector<1x256xf32>
      %c56 = arith.constant 56 : index
      %342 = memref.load %arg2[%c56] : memref<98xf32, #tpu.memory_space<smem>>
      %343 = vector.broadcast %342 : f32 to vector<1x256xf32>
      %344 = arith.mulf %343, %283 : vector<1x256xf32>
      %c57 = arith.constant 57 : index
      %345 = memref.load %arg2[%c57] : memref<98xf32, #tpu.memory_space<smem>>
      %346 = vector.broadcast %345 : f32 to vector<1x256xf32>
      %347 = arith.mulf %346, %288 : vector<1x256xf32>
      %c58 = arith.constant 58 : index
      %348 = memref.load %arg2[%c58] : memref<98xf32, #tpu.memory_space<smem>>
      %349 = vector.broadcast %348 : f32 to vector<1x256xf32>
      %350 = arith.mulf %349, %293 : vector<1x256xf32>
      %351 = arith.addf %344, %350 : vector<1x256xf32>
      %c60 = arith.constant 60 : index
      %352 = memref.load %arg2[%c60] : memref<98xf32, #tpu.memory_space<smem>>
      %353 = vector.broadcast %352 : f32 to vector<1x256xf32>
      %354 = arith.mulf %353, %298 : vector<1x256xf32>
      %355 = arith.addf %351, %354 : vector<1x256xf32>
      %c62 = arith.constant 62 : index
      %356 = memref.load %arg2[%c62] : memref<98xf32, #tpu.memory_space<smem>>
      %357 = vector.broadcast %356 : f32 to vector<1x256xf32>
      %358 = arith.mulf %357, %308 : vector<1x256xf32>
      %359 = arith.addf %355, %358 : vector<1x256xf32>
      %c59 = arith.constant 59 : index
      %360 = memref.load %arg2[%c59] : memref<98xf32, #tpu.memory_space<smem>>
      %361 = vector.broadcast %360 : f32 to vector<1x256xf32>
      %362 = arith.mulf %361, %20 : vector<1x256xf32>
      %363 = arith.addf %347, %362 : vector<1x256xf32>
      %c61 = arith.constant 61 : index
      %364 = memref.load %arg2[%c61] : memref<98xf32, #tpu.memory_space<smem>>
      %365 = vector.broadcast %364 : f32 to vector<1x256xf32>
      %366 = arith.mulf %365, %303 : vector<1x256xf32>
      %367 = arith.addf %363, %366 : vector<1x256xf32>
      %368 = arith.addf %359, %367 : vector<1x256xf32>
      %c32_i32_69 = arith.constant 32 : i32
      %369 = tpu.dynamic_rotate %368 by %c32_i32_69 dim 1 : vector<1x256xf32>, i32 -> vector<1x256xf32>
      %c2_i32_70 = arith.constant 2 : i32
      %370 = vector.broadcast %c2_i32_70 : i32 to vector<1x256xi32>
      %371 = arith.cmpi sge, %18, %370 : vector<1x256xi32>
      %cst_71 = arith.constant 0.000000e+00 : f32
      %372 = vector.broadcast %cst_71 : f32 to vector<1x256xf32>
      %373 = arith.select %371, %369, %372 : vector<1x256xi1>, vector<1x256xf32>
      %374 = arith.addf %245, %373 : vector<1x256xf32>
      %c63 = arith.constant 63 : index
      %375 = memref.load %arg2[%c63] : memref<98xf32, #tpu.memory_space<smem>>
      %376 = vector.broadcast %375 : f32 to vector<1x256xf32>
      %377 = arith.mulf %376, %283 : vector<1x256xf32>
      %c64 = arith.constant 64 : index
      %378 = memref.load %arg2[%c64] : memref<98xf32, #tpu.memory_space<smem>>
      %379 = vector.broadcast %378 : f32 to vector<1x256xf32>
      %380 = arith.mulf %379, %288 : vector<1x256xf32>
      %c65 = arith.constant 65 : index
      %381 = memref.load %arg2[%c65] : memref<98xf32, #tpu.memory_space<smem>>
      %382 = vector.broadcast %381 : f32 to vector<1x256xf32>
      %383 = arith.mulf %382, %293 : vector<1x256xf32>
      %384 = arith.addf %377, %383 : vector<1x256xf32>
      %c67 = arith.constant 67 : index
      %385 = memref.load %arg2[%c67] : memref<98xf32, #tpu.memory_space<smem>>
      %386 = vector.broadcast %385 : f32 to vector<1x256xf32>
      %387 = arith.mulf %386, %298 : vector<1x256xf32>
      %388 = arith.addf %384, %387 : vector<1x256xf32>
      %c69 = arith.constant 69 : index
      %389 = memref.load %arg2[%c69] : memref<98xf32, #tpu.memory_space<smem>>
      %390 = vector.broadcast %389 : f32 to vector<1x256xf32>
      %391 = arith.mulf %390, %308 : vector<1x256xf32>
      %392 = arith.addf %388, %391 : vector<1x256xf32>
      %c66 = arith.constant 66 : index
      %393 = memref.load %arg2[%c66] : memref<98xf32, #tpu.memory_space<smem>>
      %394 = vector.broadcast %393 : f32 to vector<1x256xf32>
      %395 = arith.mulf %394, %20 : vector<1x256xf32>
      %396 = arith.addf %380, %395 : vector<1x256xf32>
      %c68 = arith.constant 68 : index
      %397 = memref.load %arg2[%c68] : memref<98xf32, #tpu.memory_space<smem>>
      %398 = vector.broadcast %397 : f32 to vector<1x256xf32>
      %399 = arith.mulf %398, %303 : vector<1x256xf32>
      %400 = arith.addf %396, %399 : vector<1x256xf32>
      %401 = arith.addf %392, %400 : vector<1x256xf32>
      %c16_i32_72 = arith.constant 16 : i32
      %402 = tpu.dynamic_rotate %401 by %c16_i32_72 dim 1 : vector<1x256xf32>, i32 -> vector<1x256xf32>
      %c1_i32_73 = arith.constant 1 : i32
      %403 = vector.broadcast %c1_i32_73 : i32 to vector<1x256xi32>
      %404 = arith.cmpi sge, %18, %403 : vector<1x256xi32>
      %cst_74 = arith.constant 0.000000e+00 : f32
      %405 = vector.broadcast %cst_74 : f32 to vector<1x256xf32>
      %406 = arith.select %404, %402, %405 : vector<1x256xi1>, vector<1x256xf32>
      %407 = arith.addf %341, %406 : vector<1x256xf32>
      %c70 = arith.constant 70 : index
      %408 = memref.load %arg2[%c70] : memref<98xf32, #tpu.memory_space<smem>>
      %409 = vector.broadcast %408 : f32 to vector<1x256xf32>
      %410 = arith.mulf %409, %283 : vector<1x256xf32>
      %c71 = arith.constant 71 : index
      %411 = memref.load %arg2[%c71] : memref<98xf32, #tpu.memory_space<smem>>
      %412 = vector.broadcast %411 : f32 to vector<1x256xf32>
      %413 = arith.mulf %412, %288 : vector<1x256xf32>
      %c72 = arith.constant 72 : index
      %414 = memref.load %arg2[%c72] : memref<98xf32, #tpu.memory_space<smem>>
      %415 = vector.broadcast %414 : f32 to vector<1x256xf32>
      %416 = arith.mulf %415, %293 : vector<1x256xf32>
      %417 = arith.addf %410, %416 : vector<1x256xf32>
      %c74 = arith.constant 74 : index
      %418 = memref.load %arg2[%c74] : memref<98xf32, #tpu.memory_space<smem>>
      %419 = vector.broadcast %418 : f32 to vector<1x256xf32>
      %420 = arith.mulf %419, %298 : vector<1x256xf32>
      %421 = arith.addf %417, %420 : vector<1x256xf32>
      %c76 = arith.constant 76 : index
      %422 = memref.load %arg2[%c76] : memref<98xf32, #tpu.memory_space<smem>>
      %423 = vector.broadcast %422 : f32 to vector<1x256xf32>
      %424 = arith.mulf %423, %308 : vector<1x256xf32>
      %425 = arith.addf %421, %424 : vector<1x256xf32>
      %c73 = arith.constant 73 : index
      %426 = memref.load %arg2[%c73] : memref<98xf32, #tpu.memory_space<smem>>
      %427 = vector.broadcast %426 : f32 to vector<1x256xf32>
      %428 = arith.mulf %427, %20 : vector<1x256xf32>
      %429 = arith.addf %413, %428 : vector<1x256xf32>
      %c75 = arith.constant 75 : index
      %430 = memref.load %arg2[%c75] : memref<98xf32, #tpu.memory_space<smem>>
      %431 = vector.broadcast %430 : f32 to vector<1x256xf32>
      %432 = arith.mulf %431, %303 : vector<1x256xf32>
      %433 = arith.addf %429, %432 : vector<1x256xf32>
      %434 = arith.addf %425, %433 : vector<1x256xf32>
      %435 = arith.addf %374, %434 : vector<1x256xf32>
      %c77 = arith.constant 77 : index
      %436 = memref.load %arg2[%c77] : memref<98xf32, #tpu.memory_space<smem>>
      %437 = vector.broadcast %436 : f32 to vector<1x256xf32>
      %438 = arith.mulf %437, %283 : vector<1x256xf32>
      %c78 = arith.constant 78 : index
      %439 = memref.load %arg2[%c78] : memref<98xf32, #tpu.memory_space<smem>>
      %440 = vector.broadcast %439 : f32 to vector<1x256xf32>
      %441 = arith.mulf %440, %288 : vector<1x256xf32>
      %c79 = arith.constant 79 : index
      %442 = memref.load %arg2[%c79] : memref<98xf32, #tpu.memory_space<smem>>
      %443 = vector.broadcast %442 : f32 to vector<1x256xf32>
      %444 = arith.mulf %443, %293 : vector<1x256xf32>
      %445 = arith.addf %438, %444 : vector<1x256xf32>
      %c81 = arith.constant 81 : index
      %446 = memref.load %arg2[%c81] : memref<98xf32, #tpu.memory_space<smem>>
      %447 = vector.broadcast %446 : f32 to vector<1x256xf32>
      %448 = arith.mulf %447, %298 : vector<1x256xf32>
      %449 = arith.addf %445, %448 : vector<1x256xf32>
      %c83 = arith.constant 83 : index
      %450 = memref.load %arg2[%c83] : memref<98xf32, #tpu.memory_space<smem>>
      %451 = vector.broadcast %450 : f32 to vector<1x256xf32>
      %452 = arith.mulf %451, %308 : vector<1x256xf32>
      %453 = arith.addf %449, %452 : vector<1x256xf32>
      %c80 = arith.constant 80 : index
      %454 = memref.load %arg2[%c80] : memref<98xf32, #tpu.memory_space<smem>>
      %455 = vector.broadcast %454 : f32 to vector<1x256xf32>
      %456 = arith.mulf %455, %20 : vector<1x256xf32>
      %457 = arith.addf %441, %456 : vector<1x256xf32>
      %c82 = arith.constant 82 : index
      %458 = memref.load %arg2[%c82] : memref<98xf32, #tpu.memory_space<smem>>
      %459 = vector.broadcast %458 : f32 to vector<1x256xf32>
      %460 = arith.mulf %459, %303 : vector<1x256xf32>
      %461 = arith.addf %457, %460 : vector<1x256xf32>
      %462 = arith.addf %453, %461 : vector<1x256xf32>
      %c240_i32_75 = arith.constant 240 : i32
      %463 = tpu.dynamic_rotate %462 by %c240_i32_75 dim 1 : vector<1x256xf32>, i32 -> vector<1x256xf32>
      %c15_i32_76 = arith.constant 15 : i32
      %464 = vector.broadcast %c15_i32_76 : i32 to vector<1x256xi32>
      %465 = arith.cmpi slt, %18, %464 : vector<1x256xi32>
      %cst_77 = arith.constant 0.000000e+00 : f32
      %466 = vector.broadcast %cst_77 : f32 to vector<1x256xf32>
      %467 = arith.select %465, %463, %466 : vector<1x256xi1>, vector<1x256xf32>
      %468 = arith.addf %407, %467 : vector<1x256xf32>
      %c84 = arith.constant 84 : index
      %469 = memref.load %arg2[%c84] : memref<98xf32, #tpu.memory_space<smem>>
      %470 = vector.broadcast %469 : f32 to vector<1x256xf32>
      %471 = arith.mulf %470, %283 : vector<1x256xf32>
      %c85 = arith.constant 85 : index
      %472 = memref.load %arg2[%c85] : memref<98xf32, #tpu.memory_space<smem>>
      %473 = vector.broadcast %472 : f32 to vector<1x256xf32>
      %474 = arith.mulf %473, %288 : vector<1x256xf32>
      %c86 = arith.constant 86 : index
      %475 = memref.load %arg2[%c86] : memref<98xf32, #tpu.memory_space<smem>>
      %476 = vector.broadcast %475 : f32 to vector<1x256xf32>
      %477 = arith.mulf %476, %293 : vector<1x256xf32>
      %478 = arith.addf %471, %477 : vector<1x256xf32>
      %c88 = arith.constant 88 : index
      %479 = memref.load %arg2[%c88] : memref<98xf32, #tpu.memory_space<smem>>
      %480 = vector.broadcast %479 : f32 to vector<1x256xf32>
      %481 = arith.mulf %480, %298 : vector<1x256xf32>
      %482 = arith.addf %478, %481 : vector<1x256xf32>
      %c90 = arith.constant 90 : index
      %483 = memref.load %arg2[%c90] : memref<98xf32, #tpu.memory_space<smem>>
      %484 = vector.broadcast %483 : f32 to vector<1x256xf32>
      %485 = arith.mulf %484, %308 : vector<1x256xf32>
      %486 = arith.addf %482, %485 : vector<1x256xf32>
      %c87 = arith.constant 87 : index
      %487 = memref.load %arg2[%c87] : memref<98xf32, #tpu.memory_space<smem>>
      %488 = vector.broadcast %487 : f32 to vector<1x256xf32>
      %489 = arith.mulf %488, %20 : vector<1x256xf32>
      %490 = arith.addf %474, %489 : vector<1x256xf32>
      %c89 = arith.constant 89 : index
      %491 = memref.load %arg2[%c89] : memref<98xf32, #tpu.memory_space<smem>>
      %492 = vector.broadcast %491 : f32 to vector<1x256xf32>
      %493 = arith.mulf %492, %303 : vector<1x256xf32>
      %494 = arith.addf %490, %493 : vector<1x256xf32>
      %495 = arith.addf %486, %494 : vector<1x256xf32>
      %c224_i32_78 = arith.constant 224 : i32
      %496 = tpu.dynamic_rotate %495 by %c224_i32_78 dim 1 : vector<1x256xf32>, i32 -> vector<1x256xf32>
      %c14_i32_79 = arith.constant 14 : i32
      %497 = vector.broadcast %c14_i32_79 : i32 to vector<1x256xi32>
      %498 = arith.cmpi slt, %18, %497 : vector<1x256xi32>
      %cst_80 = arith.constant 0.000000e+00 : f32
      %499 = vector.broadcast %cst_80 : f32 to vector<1x256xf32>
      %500 = arith.select %498, %496, %499 : vector<1x256xi1>, vector<1x256xf32>
      %501 = arith.addf %435, %500 : vector<1x256xf32>
      %c91 = arith.constant 91 : index
      %502 = memref.load %arg2[%c91] : memref<98xf32, #tpu.memory_space<smem>>
      %503 = vector.broadcast %502 : f32 to vector<1x256xf32>
      %504 = arith.mulf %503, %283 : vector<1x256xf32>
      %c92 = arith.constant 92 : index
      %505 = memref.load %arg2[%c92] : memref<98xf32, #tpu.memory_space<smem>>
      %506 = vector.broadcast %505 : f32 to vector<1x256xf32>
      %507 = arith.mulf %506, %288 : vector<1x256xf32>
      %c93 = arith.constant 93 : index
      %508 = memref.load %arg2[%c93] : memref<98xf32, #tpu.memory_space<smem>>
      %509 = vector.broadcast %508 : f32 to vector<1x256xf32>
      %510 = arith.mulf %509, %293 : vector<1x256xf32>
      %511 = arith.addf %504, %510 : vector<1x256xf32>
      %c95 = arith.constant 95 : index
      %512 = memref.load %arg2[%c95] : memref<98xf32, #tpu.memory_space<smem>>
      %513 = vector.broadcast %512 : f32 to vector<1x256xf32>
      %514 = arith.mulf %513, %298 : vector<1x256xf32>
      %515 = arith.addf %511, %514 : vector<1x256xf32>
      %c97 = arith.constant 97 : index
      %516 = memref.load %arg2[%c97] : memref<98xf32, #tpu.memory_space<smem>>
      %517 = vector.broadcast %516 : f32 to vector<1x256xf32>
      %518 = arith.mulf %517, %308 : vector<1x256xf32>
      %519 = arith.addf %515, %518 : vector<1x256xf32>
      %c94 = arith.constant 94 : index
      %520 = memref.load %arg2[%c94] : memref<98xf32, #tpu.memory_space<smem>>
      %521 = vector.broadcast %520 : f32 to vector<1x256xf32>
      %522 = arith.mulf %521, %20 : vector<1x256xf32>
      %523 = arith.addf %507, %522 : vector<1x256xf32>
      %c96 = arith.constant 96 : index
      %524 = memref.load %arg2[%c96] : memref<98xf32, #tpu.memory_space<smem>>
      %525 = vector.broadcast %524 : f32 to vector<1x256xf32>
      %526 = arith.mulf %525, %303 : vector<1x256xf32>
      %527 = arith.addf %523, %526 : vector<1x256xf32>
      %528 = arith.addf %519, %527 : vector<1x256xf32>
      %c208_i32_81 = arith.constant 208 : i32
      %529 = tpu.dynamic_rotate %528 by %c208_i32_81 dim 1 : vector<1x256xf32>, i32 -> vector<1x256xf32>
      %c13_i32_82 = arith.constant 13 : i32
      %530 = vector.broadcast %c13_i32_82 : i32 to vector<1x256xi32>
      %531 = arith.cmpi slt, %18, %530 : vector<1x256xi32>
      %cst_83 = arith.constant 0.000000e+00 : f32
      %532 = vector.broadcast %cst_83 : f32 to vector<1x256xf32>
      %533 = arith.select %531, %529, %532 : vector<1x256xi1>, vector<1x256xf32>
      %534 = arith.addf %468, %533 : vector<1x256xf32>
      %535 = arith.addf %534, %501 : vector<1x256xf32>
      %536 = arith.negf %535 : vector<1x256xf32>
      %537 = math.exp %536 : vector<1x256xf32>
      %cst_84 = arith.constant 1.000000e+00 : f32
      %538 = vector.broadcast %cst_84 : f32 to vector<1x256xf32>
      %539 = arith.addf %538, %537 : vector<1x256xf32>
      %540 = arith.divf %538, %539 : vector<1x256xf32>
      %c0_85 = arith.constant 0 : index
      %c0_86 = arith.constant 0 : index
      %c0_87 = arith.constant 0 : index
      %541 = vector.load %arg5[%c0_85, %c0_86, %c0_87] : memref<1x1x256xf32, #tpu.memory_space<vmem>>, vector<1x1x256xf32>
      %542 = vector.shape_cast %541 : vector<1x1x256xf32> to vector<1x256xf32>
      %543 = vector.shape_cast %540 : vector<1x256xf32> to vector<1x1x256xf32>
      tpu.vector_store %arg5[%c0_85, %c0_86, %c0_87], %543 {strides = array<i32>} : memref<1x1x256xf32, #tpu.memory_space<vmem>>, vector<1x1x256xf32>,
    } else {
    }
    return
  }
  func.func @transform_0(%arg0: i32, %arg1: i32) -> i32 {
    %c0_i32 = arith.constant 0 : i32
    %c0_i32_0 = arith.constant 0 : i32
    return %c0_i32 : i32
  }
  func.func @transform_1(%arg0: i32, %arg1: i32) -> (i32, i32, i32) {
    %c0_i32 = arith.constant 0 : i32
    %c0_i32_0 = arith.constant 0 : i32
    %c0_i32_1 = arith.constant 0 : i32
    %c0_i32_2 = arith.constant 0 : i32
    return %c0_i32, %c0_i32_0, %c0_i32_1 : i32, i32, i32
  }
  func.func @transform_2(%arg0: i32, %arg1: i32) -> (i32, i32, i32) {
    %c0_i32 = arith.constant 0 : i32
    %c0_i32_0 = arith.constant 0 : i32
    return %arg0, %arg1, %c0_i32 : i32, i32, i32
  }
  func.func @transform_3(%arg0: i32, %arg1: i32) -> (i32, i32, i32) {
    %c0_i32 = arith.constant 0 : i32
    %c0_i32_0 = arith.constant 0 : i32
    %c0_i32_1 = arith.constant 0 : i32
    return %arg0, %c0_i32, %c0_i32_0 : i32, i32, i32
  }
}

</mosaic_0001>

<bundles_post_ra>
// kernel: tpu_custom_call.1
= control target key start
LH: loop header
LB: loop body
LE: loop exit
PB: predicated region body
PF: predicated region fallthrough
CT: control target
= control target key end

     0   :  { %s3239_s0 = inlined_call_operand.hbm [shape: f32[98], index: 0, kind: input, shape index: {}]   ;;  %s3240_s1 = inlined_call_operand.hbm [shape: s32[2,1,256], index: 1, kind: input, shape index: {}]   ;;  %s3241_s2 = inlined_call_operand.hbm [shape: f32[2,4,256], index: 2, kind: input, shape index: {}]   ;;  %s3242_s3 = inlined_call_operand.hbm [shape: f32[2,1,256], index: 3, kind: output, shape index: {}]  }
   0x1   :  { %3321 = sst [smem:[#allocation84_spill]] %s3239_s0 }
   0x2   :  { %3322 = sst [smem:[#allocation85_spill]] %s3240_s1 }
   0x3   :  { %3323 = sst [smem:[#allocation86_spill]] %s3241_s2 }
   0x4   :  { %3324 = sst [smem:[#allocation87_spill]] %s3242_s3 }
   0x5   :  { %8 = vsyncpa [#allocation7], 0 }
   0x6   :  { %9 = vsyncpa [#allocation5], 0 }
   0x7   :  { %10 = vsyncpa [#allocation10], 0 }
   0x8   :  { %12 = vsyncpa [#allocation10 + $0x1], 0 }
   0x9   :  { %13 = vsyncpa [#allocation6], 0 }
   0xa   :  { %15 = vsyncpa [#allocation6 + $0x1], 0  ;;  %s2055_s12 = smov 0   ;;  %s2057_s13 = smov 0  }
   0xb   :  { %s2059_s14 = smov 0   ;;  %s2061_s15 = smov 0  }
   0xc   :  { %s2063_s16 = smov 0   ;;  %s2065_s17 = smov 0  }
   0xd LB: > { %3325 = sst [smem:[#allocation16_spill]] %s1992_s12  ;;  %s1627_s18 = sadd.s32 4294967295, %s2012_s17   ;;  %s2012_s17 = sphi %s2065_s17, %s21_s17   ;;  %s2008_s16 = sphi %s2063_s16, %s3560_s16   ;;  %s2004_s15 = sphi %s2061_s15, %s3559_s15   ;;  %s2000_s14 = sphi %s2059_s14, %s3558_s14   ;;  %s1996_s13 = sphi %s2057_s13, %s3557_s13   ;;  %s1992_s12 = sphi %s2055_s12, %s3556_s12  }
   0xe   : > { %3326 = sst [smem:[#allocation17_spill]] %s1996_s13  ;;  %s1628_s19 = sadd.s32 4294967294, %s2012_s17  }
   0xf   : > { %3327 = sst [smem:[#allocation18_spill]] %s2000_s14  ;;  %p97_p0 = scmp.ne.s32.totalorder %s1996_s13, %s1992_s12 }
  0x10   : > { %3328 = sst [smem:[#allocation19_spill]] %s2004_s15  ;;  %p2089_p1 = scmp.eq.s32.totalorder %s1627_s18, 0 }
  0x11   : > { %3329 = sst [smem:[#allocation20_spill]] %s2008_s16  ;;  %p2093_p2 = scmp.eq.s32.totalorder %s1627_s18, 1 }
  0x12   : > { %3330 = sst [smem:[#allocation21_spill]] %s2012_s17  ;;  %p127_p3 = scmp.eq.s32.totalorder %s1628_s19, 1 }
  0x13   : > { %s3331_s20 = scalar_select %p2089_p1, 1, 0 }
  0x14   : > { %p2099_p4 = por %p2089_p1, %p97_p0  ;;  %p1629_p5 = scmp.ge.s32.totalorder %s2012_s17, 1 }
  0x15   : > { %p2104_p6 = por %p127_p3, %p97_p0  ;;  %p134_p7 = scmp.lt.s32.totalorder %s2012_s17, 3 }
  0x16   : > { %s3333_s22 = scalar_select %p2099_p4, 1, 0 }
  0x17   : > { %s3334_s23 = scalar_select %p2104_p6, 1, 0 }
  0x18   : > { %p2109_p8 = pnand %p1629_p5, %p134_p7  ;;  %s2014_s25 = smov [#allocation8]  }
  0x19   : > { %3335 = sst [smem:[#allocation22_spill]] %s3334_s23  ;;  %s155_s26 = sshll.u32 %s2014_s25, 4  ;;  %s2116_s26 = int_to_ptr.vmem [resolvable:$true] %s155_s26 }
  0x1a   : > { %p1758_p10 = pneg %p2109_p8  ;;  %s3338_s0 = sld [smem:[#allocation84_spill]] }
  0x1c   : > { %p2120_p11 = pnand %p1758_p10, %p2089_p1 }
  0x1e   : > { %p1853_p13 = pneg %p2120_p11 }
  0x20   : > { %s1851_s30 = scalar_lea.hbm %s3338_s0, 16 }
  0x21   : > { %p1852_p12 = scmp.ne.s32.totalorder %s3338_s0, %s1851_s30  ;;  %p1858_p5 = scmp.lt.u32.totalorder %s1851_s30, %s3338_s0 }
  0x23   : > { %p1854_p0 = pnand %p1853_p13, %p1852_p12 }
  0x25   : > { %p1855_p3 = pneg %p1854_p0 }
  0x27   : > { %p1860_p7 = pnand %p1858_p5, %p1855_p3 }
  0x29   : > { %1863 = shalt.err (!%p1860_p7)
}
  0x2a   : > { %s2015_s8 = smov [#allocation4]   ;;  %s3339_s1 = sld [smem:[#allocation85_spill]] }
  0x2b   : > { %1761 = dma.hbm_to_smem (!%p2120_p11), %s3338_s0, 16, %s2015_s8, [#allocation7]  }
  0x30   : > { %s1864_s19 = scalar_lea.hbm %s3339_s1, 64 }
  0x31   : > { %p1865_p10 = scmp.ne.s32.totalorder %s3339_s1, %s1864_s19  ;;  %p1871_p3 = scmp.lt.u32.totalorder %s1864_s19, %s3339_s1 }
  0x33   : > { %p1867_p12 = pnand %p1865_p10, %p1853_p13 }
  0x35   : > { %p1868_p0 = pneg %p1867_p12 }
  0x37   : > { %p1873_p5 = pnand %p1871_p3, %p1868_p0 }
  0x39   : > { %1876 = shalt.err (!%p1873_p5)
}
  0x3a   : > { %s1877_s4 = scalar_lea.vmem %s2116_s26, 64  ;;  %p1885_p4 = scmp.lt.s32.totalorder %s2116_s26, %s2116_s26 }
  0x3b   : > { %p1878_p7 = scmp.ne.s32.totalorder %s2116_s26, %s1877_s4  ;;  %p1886_p10 = scmp.lt.s32.totalorder %s1877_s4, %s1877_s4 }
  0x3d   : > { %p1880_p9 = pnand %p1878_p7, %p1853_p13  ;;  %p1887_p12 = por %p1886_p10, %p1885_p4 }
  0x3f   : > { %p1881_p6 = pneg %p1880_p9 }
  0x41   : > { %p1888_p1 = pnand %p1887_p12, %p1881_p6 }
  0x43   : > { %1891 = shalt.err (!%p1888_p1)
}
  0x44   : > { %s2016_s5 = smov 32   ;;  %s2017_s6 = smov 2  }
  0x45   : > { %1764 = dma.hbm_to_vmem [thread:$0]  (!%p2120_p11), %s3339_s1, 64, %s2116_s26, [#allocation5], %s2016_s5, %s2016_s5, %s2017_s6  }
  0x46   : > { %s33_s9 = sadd.s32 1, %s2008_s16  ;;  %s84_s10 = sadd.s32 1, %s2000_s14 }
  0x47   : > { %p35_p1 = scmp.ge.s32.totalorder %s33_s9, 2  ;;  %p91_p4 = scmp.ne.s32.totalorder %s2000_s14, %s1996_s13 }
  0x48   : > { %p92_p6 = scmp.eq.s32.totalorder %s2012_s17, 0  ;;  %p1775_p9 = scmp.lt.s32.totalorder %s2012_s17, 2 }
  0x49   : > { %s3562_s9 = smov (%p35_p1, %s33_s9), 0  ;;  %p2178_p0 = por %p2093_p2, %p91_p4 }
  0x4a   : > { %3340 = sst [smem:[#allocation23_spill]] %s3562_s9  ;;  %p93_p13 = por %p92_p6, %p91_p4 }
  0x4b   : > { %s3341_s11 = scalar_select %p2178_p0, 1, 0 }
  0x4c   : > { %s79_s27 = ssub.s32 %s2008_s16, %s3562_s9  ;;  %s169_s18 = sand.u32 1, %s2000_s14  }
  0x4d   : > { %3342 = sst [smem:[#allocation24_spill]] %s3341_s11  ;;  %p82_p3 = scmp.eq.s32.totalorder %s79_s27, 0 }
  0x4e   : > { %s1633_s26 = sshll.u32 %s169_s18, 3  ;;  %s1744_s19 = sshll.u32 %s2008_s16, 7 }
  0x4f   : > { %s2187_s25 = scalar_select %p82_p3, %s2000_s14, %s84_s10  }
  0x50   : > { %s3344_s2 = sld [smem:[#allocation86_spill]]  ;;  %s173_s21 = scalar_lea.vmem [#allocation9], %s1633_s26 }
  0x51   : > { %3343 = sst [smem:[#allocation25_spill]] %s2187_s25  ;;  %s183_s4 = sshll.u32 %s173_s21, 4  ;;  %s2200_s4 = int_to_ptr.vmem [resolvable:$true] %s183_s4 }
  0x52   : > { %p2196_p2 = pnand %p1775_p9, %p93_p13  ;;  %s170_s6 = scalar_lea.sflag [#allocation10], %s169_s18 }
  0x54   : > { %p1894_p5 = pneg %p2196_p2 }
  0x56   : > { %s2192_s30 = scalar_lea.hbm %s3344_s2, %s1744_s19  ;;  %s1897_s27 = scalar_lea.hbm %s3344_s2, 256 }
  0x57   : > { %s1892_s7 = scalar_lea.hbm %s2192_s30, 128  ;;  %p1898_p12 = scmp.lt.u32.totalorder %s2192_s30, %s3344_s2 }
  0x58   : > { %p1893_p11 = scmp.ne.s32.totalorder %s2192_s30, %s1892_s7  ;;  %p1899_p1 = scmp.lt.u32.totalorder %s1897_s27, %s1892_s7 }
  0x59   : > { %p1901_p6 = scmp.lt.u32.totalorder %s1892_s7, %s2192_s30 }
  0x5a   : > { %p1895_p7 = pnand %p1894_p5, %p1893_p11  ;;  %p1900_p4 = por %p1899_p1, %p1898_p12 }
  0x5c   : > { %p1896_p10 = pneg %p1895_p7  ;;  %p1902_p9 = por %p1901_p6, %p1900_p4 }
  0x5e   : > { %p1903_p13 = pnand %p1902_p9, %p1896_p10 }
  0x60   : > { %1906 = shalt.err (!%p1903_p13)
}
  0x61   : > { %s1907_s18 = scalar_lea.vmem %s2200_s4, 128  ;;  %s2018_s28 = smov [#allocation9]  }
  0x62   : > { %p1908_p3 = scmp.ne.s32.totalorder %s2200_s4, %s1907_s18  ;;  %s1912_s29 = sshll.u32 %s2018_s28, 4  ;;  %s1913_s29 = int_to_ptr.vmem [resolvable:$false] %s1912_s29 }
  0x63   : > { %s1914_s21 = scalar_lea.vmem %s1913_s29, 256  ;;  %p1915_p0 = scmp.lt.s32.totalorder %s2200_s4, %s1913_s29 }
  0x64   : > { %p1910_p11 = pnand %p1908_p3, %p1894_p5  ;;  %p1916_p12 = scmp.lt.s32.totalorder %s1914_s21, %s1907_s18 }
  0x66   : > { %p1911_p7 = pneg %p1910_p11  ;;  %p1917_p1 = por %p1916_p12, %p1915_p0 }
  0x68   : > { %p1918_p4 = pnand %p1917_p1, %p1911_p7 }
  0x6a   : > { %1921 = shalt.err (!%p1918_p4)
}
  0x6b   : > { %1768 = dma.hbm_to_vmem [thread:$0]  (!%p2196_p2), %s2192_s30, 128, %s2200_s4, %s170_s6  }
  0x6c   : > { %192 = sbr.rel (%p2109_p8) target bundleno = 533 (0x215), region = 32 }
  0x73   : > { %p3346_p5 = scmp.ne.s32.totalorder %s3331_s20, 0 }
  0x75   : > { %1975 = dma.done.wait (%p3346_p5), [#allocation7], 16  }
  0x76   : > { %1977 = vsyncadd (%p3346_p5), [#allocation7], 4294967280 }
  0x77   : > { %1979 = dma.done.wait (%p3346_p5), [#allocation5], 64  }
  0x78   : > { %1981 = vsyncadd (%p3346_p5), [#allocation5], 4294967232  ;;  %s2238_s5 = sand.u32 1, %s1996_s13   ;;  %p3348_p8 = scmp.ne.s32.totalorder %s3333_s22, 0 }
  0x79   : > { %3347 = sst [smem:[#allocation26_spill]] %s2238_s5  ;;  %s1639_s24 = sshll.u32 %s2238_s5, 3 }
  0x7a   : > { %s203_s30 = scalar_lea.sflag [#allocation10], %s2238_s5  ;;  %s206_s4 = scalar_lea.vmem [#allocation9], %s1639_s24 }
  0x7b   : > { %1983 = dma.done.wait (%p3348_p8), %s203_s30, 128  }
  0x7c   : > { %1985 = vsyncadd (%p3348_p8), %s203_s30, 4294967168 }
  0x7d   : > { %211 = sfence }
  0x7e   : > { %v234_v0 = vlaneseq  ;;  %v240_v1 = vld [vmem:[%s206_s4] sm:$0xff]  ;;  %vm244_vm0 = vcmask 1043456   ;;  %v2019_v7 = vmov 0.0   ;;  %v2020_v9 = vmov -inf   ;;  %s2022_s20 = smov 1   ;;  %s2023_s22 = smov 3  }
  0x7f   : > { %v242_v2 = vcombine.high %v240_v1, %v240_v1  ;;  %v245_v3 = vsel %vm244_vm0, %v240_v1, 0.0  ;;  %v259_v6 = vsel %vm244_vm0, %v240_v1, -inf  ;;  %v2021_v18 = vmov 1966171168   ;;  %s2024_s6 = smov 2   ;;  %s2025_s7 = smov 127  }
  0x80   : > { %vm2247_vm1 = vcmp.lt.s32.totalorder %v234_v0, 256  ;;  %v246_v5 = vrot.slane %v245_v3, 4  ;;  %v260_v10 = vrot.slane %v259_v6, 4  ;;  %v278_v19 = vunpack.c.l.s4 %v2021_v18  ;;  %s2026_s8 = smov 126   ;;  %s2027_s10 = smov 125  }
  0x81   : > { %238 = vst.msk [vmem:[#allocation2] sm:$0x3] %vm2247_vm1, %v2019_v7  ;;  %v252_v8 = vsel %vm244_vm0, %v242_v2, 0.0  ;;  %239 = vst.msk [vmem:[#allocation3] sm:$0x3] %vm2247_vm1, %v2020_v9  ;;  %v266_v11 = vsel %vm244_vm0, %v242_v2, -inf }
  0x82   : > { %v247_v12 = vadd.f32 %v246_v5, %v245_v3  ;;  %v253_v13 = vrot.slane %v252_v8, 4  ;;  %v261_v14 = vmax.f32 %v259_v6, %v260_v10  ;;  %v267_v15 = vrot.slane %v266_v11, 4  ;;  %s2282_s27 = sld [smem:[#allocation4]]  ;;  %s2284_s26 = sld [smem:[#allocation4 + $0x2]] }
  0x83   : > { %v279_v28 = vunpack.c.0.s8 %v278_v19  ;;  %v281_v29 = vshrl.u32 %v234_v0, 7  ;;  %s2286_s19 = sld [smem:[#allocation4 + $0xe]]  ;;  %s2288_s18 = sld [smem:[#allocation4 + $0x10]]  ;;  %v2375_v57 = vand.u32 127, %v234_v0 }
  0x84   : > { %v248_v16 = vrot.slane %v247_v12, 2  ;;  %v254_v17 = vadd.f32 %v253_v13, %v252_v8  ;;  %v262_v20 = vrot.slane %v261_v14, 2  ;;  %v268_v21 = vmax.f32 %v266_v11, %v267_v15  ;;  %s2290_s28 = sld [smem:[#allocation4 + $0x1c]]  ;;  %s2292_s29 = sld [smem:[#allocation4 + $0x1e]] }
  0x85   : > { %v2256_v37 = vsub.s32 %v279_v28, %v281_v29  ;;  %v2266_v49 = vsub.s32 0, %v281_v29  ;;  %v2268_v50 = vsub.s32 1, %v281_v29  ;;  %s2294_s21 = sld [smem:[#allocation4 + $0x7]]  ;;  %s2296_s24 = sld [smem:[#allocation4 + $0x9]]  ;;  %vm398_vm2 = vcmp.lt.s32.totalorder %v2375_v57, 1 }
  0x86   : > { %v249_v22 = vadd.f32 %v248_v16, %v247_v12  ;;  %v255_v23 = vrot.slane %v254_v17, 2  ;;  %v263_v24 = vmax.f32 %v261_v14, %v262_v20  ;;  %v269_v25 = vrot.slane %v268_v21, 2  ;;  %s2298_s30 = sld [smem:[#allocation4 + $0x1]]  ;;  %s2300_s4 = sld [smem:[#allocation4 + $0x3]] }
  0x87   : > { %s2314_s0 = sld [smem:[#allocation4 + $0x12]]  ;;  %s2320_s9 = sld [smem:[#allocation4 + $0x2c]]  ;;  %vm344_vm3 = vcmp.lt.s32.totalorder %v2375_v57, 3  ;;  %vm371_vm4 = vcmp.lt.s32.totalorder %v2375_v57, 2  ;;  %vm425_vm7 = vcmp.lt.s32.totalorder %v2375_v57, 127  ;;  %vm452_vm9 = vcmp.lt.s32.totalorder %v2375_v57, 126 }
  0x88   : > { %v250_v26 = vrot.slane %v249_v22, 1  ;;  %v256_v27 = vadd.f32 %v255_v23, %v254_v17  ;;  %v264_v30 = vrot.slane %v263_v24, 1  ;;  %v270_v31 = vmax.f32 %v268_v21, %v269_v25  ;;  %v273_v42 = vld [vmem:[#allocation2] sm:$0x3]  ;;  %v298_v45 = vld [vmem:[#allocation3] sm:$0x3] }
  0x89   : > { %3351 = sst [smem:[#allocation27_spill]] %s2282_s27  ;;  %s2316_s1 = sld [smem:[#allocation4 + $0xa]]  ;;  %v503_v58 = vstv %s2282_s27  ;;  %v509_v59 = vstv %s2284_s26  ;;  %v635_v62 = vstv %s2286_s19  ;;  %v641_v63 = vstv %s2288_s18 }
  0x8a   : > { %v251_v32 = vadd.f32 %v250_v26, %v249_v22  ;;  %v257_v33 = vrot.slane %v256_v27, 1  ;;  %v265_v34 = vmax.f32 %v263_v24, %v264_v30  ;;  %v271_v35 = vrot.slane %v270_v31, 1  ;;  %3352 = sst [smem:[#allocation28_spill]] %s2284_s26  ;;  %s2318_s2 = sld [smem:[#allocation4 + $0x2a]] }
  0x8b   : > { %3353 = sst [smem:[#allocation29_spill]] %s2286_s19  ;;  %s2322_s16 = sld [smem:[#allocation4 + $0x20]]  ;;  %v729_v0 = vstv %s2290_s28  ;;  %v735_v2 = vstv %s2292_s29  ;;  %v569_v3 = vstv %s2294_s21  ;;  %v575_v5 = vstv %s2296_s24 }
  0x8c   : > { %v258_v36 = vadd.f32 %v257_v33, %v256_v27  ;;  %v272_v38 = vmax.f32 %v270_v31, %v271_v35  ;;  %3354 = sst [smem:[#allocation30_spill]] %s2288_s18  ;;  %s2324_s25 = sld [smem:[#allocation4 + $0x2b]]  ;;  %v521_v60 = vstv %s2300_s4  ;;  %v506_v7 = vstv %s2298_s30 }
  0x8d   : > { %3355 = sst [smem:[#allocation31_spill]] %s2290_s28  ;;  %s2326_s14 = sld [smem:[#allocation4 + $0x5]]  ;;  %v645_v12 = vstv %s2314_s0  ;;  %v867_v18 = vstv %s2320_s9  ;;  %vm479_vm11 = vcmp.lt.s32.totalorder %v2375_v57, 125  ;;  %vm610_vm14 = vcmp.lt.s32.totalorder %v2375_v57, 32 }
  0x8e   : > { %v276_v39 = vcombine.low %v251_v32, %v258_v36  ;;  %v301_v40 = vcombine.low %v265_v34, %v272_v38  ;;  %3356 = sst [smem:[#allocation32_spill]] %s2292_s29  ;;  %s2328_s13 = sld [smem:[#allocation4 + $0xb]]  ;;  %vm836_vm15 = vcmp.lt.s32.totalorder %v2375_v57, 96  ;;  %vm676_vm0 = vcmp.lt.s32.totalorder %v2375_v57, 16 }
  0x8f   : > { %3357 = sst [smem:[#allocation33_spill]] %s2294_s21  ;;  %s2330_s17 = sld [smem:[#allocation4 + $0x13]]  ;;  %v587_v6 = vstv %s2316_s1 }
  0x90   : > { %v283_v41 = vrot.slane %v276_v39, %v2256_v37  ;;  %v308_v43 = vrot.slane %v301_v40, %v2256_v37  ;;  %3358 = sst [smem:[#allocation34_spill]] %s2296_s24  ;;  %s2332_s23 = sld [smem:[#allocation4 + $0x21]]  ;;  %v861_v17 = vstv %s2318_s2 }
  0x91   : > { %3359 = sst [smem:[#allocation35_spill]] %s2298_s30  ;;  %s2334_s12 = sld [smem:[#allocation4 + $0x6]] }
  0x92   : > { %v290_v44 = vrot.slane %v283_v41, %v2256_v37  ;;  %v315_v46 = vrot.slane %v308_v43, %v2256_v37  ;;  %3364 = sst [smem:[#allocation40_spill]] %s2314_s0  ;;  %s2336_s3 = sld [smem:[#allocation4 + $0xc]] }
  0x93   : > { %3365 = sst [smem:[#allocation41_spill]] %s2318_s2  ;;  %s2338_s11 = sld [smem:[#allocation4 + $0x14]] }
  0x94   : > { %v292_v47 = vadd.f32 %v290_v44, %v273_v42  ;;  %v317_v48 = vmax.f32 %v298_v45, %v315_v46  ;;  %3366 = sst [smem:[#allocation42_spill]] %s2320_s9  ;;  %s2342_s5 = sld [smem:[#allocation4 + $0x46]] }
  0x95   : > { %3367 = sst [smem:[#allocation43_spill]] %s2322_s16  ;;  %s2340_s15 = sld [smem:[#allocation4 + $0x22]] }
  0x96   : > { %297 = vst.msk [vmem:[#allocation2] sm:$0x3] %vm2247_vm1, %v292_v47  ;;  %318 = vst.msk [vmem:[#allocation3] sm:$0x3] %vm2247_vm1, %v317_v48  ;;  %3368 = sst [smem:[#allocation44_spill]] %s2324_s25  ;;  %s2344_s16 = sld [smem:[#allocation4 + $0xd]] }
  0x97   : > { %3369 = sst [smem:[#allocation45_spill]] %s2326_s14  ;;  %s2348_s14 = sld [smem:[#allocation4 + $0x23]]  ;;  %v517_v23 = vstv %s2334_s12 }
  0x98   : > { %3370 = sst [smem:[#allocation46_spill]] %s2328_s13  ;;  %s2346_s25 = sld [smem:[#allocation4 + $0x2d]] }
  0x99   : > { %3371 = sst [smem:[#allocation47_spill]] %s2330_s17  ;;  %s2350_s13 = sld [smem:[#allocation4 + $0x48]] }
  0x9a   : > { %3372 = sst [smem:[#allocation48_spill]] %s2332_s23  ;;  %s2352_s23 = sld [smem:[#allocation4 + $0x2e]] }
  0x9b   : > { %3373 = sst [smem:[#allocation49_spill]] %s2334_s12  ;;  %s2401_s4 = sld [smem:[#allocation4 + $0x37]] }
  0x9c   : > { %3374 = sst [smem:[#allocation50_spill]] %s2336_s3  ;;  %s2354_s3 = sld [smem:[#allocation4 + $0x24]] }
  0x9d   : > { %v2270_v51 = vld [vmem:[#allocation2] sm:$0x3]  ;;  %v2276_v54 = vld [vmem:[#allocation3] sm:$0x3]  ;;  %3375 = sst [smem:[#allocation51_spill]] %s2338_s11  ;;  %s2356_s11 = sld [smem:[#allocation4 + $0x25]] }
  0x9e   : > { %v331_v52 = vrot.slane %v2270_v51, %v2266_v49  ;;  %v335_v53 = vrot.slane %v2270_v51, %v2268_v50  ;;  %v934_v55 = vrot.slane %v2276_v54, %v2268_v50  ;;  %v930_v56 = vrot.slane %v2276_v54, %v2266_v49  ;;  %3376 = sst [smem:[#allocation52_spill]] %s2340_s15  ;;  %s2358_s15 = sld [smem:[#allocation4 + $0x30]] }
  0x9f   : > { %3377 = sst [smem:[#allocation53_spill]] %s2342_s5  ;;  %s2360_s5 = sld [smem:[#allocation4 + $0x2f]]  ;;  %v2407_v8 = vmul.f32 %v521_v60, %v2270_v51  ;;  %v2429_v16 = vmul.f32 %v587_v6, %v2270_v51  ;;  %v879_v22 = vstv %s2346_s25 }
  0xa0   : > { %394 = vrot.lane.b32.xlu1 %v331_v52, %s2022_s20  ;;  %338 = vrot.lane.b32.xlu0 %v331_v52, %s2023_s22  ;;  %3378 = sst [smem:[#allocation54_spill]] %s2344_s16  ;;  %s2372_s17 = sld [smem:[#allocation4 + $0x31]]  ;;  %v2464_v33 = vmul.f32 %v879_v22, %v2270_v51 }
  0xa1   : > { %3379 = sst [smem:[#allocation55_spill]] %s2348_s14  ;;  %s2362_s16 = sld [smem:[#allocation4 + $0x26]] }
  0xa2   : > { %3380 = sst [smem:[#allocation56_spill]] %s2350_s13  ;;  %s2364_s14 = sld [smem:[#allocation4 + $0x15]] }
  0xa3   : > { %3381 = sst [smem:[#allocation57_spill]] %s2352_s23  ;;  %s2366_s13 = sld [smem:[#allocation4 + $0x27]] }
  0xa4   : > { %396 = vrot.lane.b32.xlu1 %v335_v53, %s2022_s20  ;;  %340 = vrot.lane.b32.xlu0 %v335_v53, %s2023_s22  ;;  %3382 = sst [smem:[#allocation58_spill]] %s2354_s3  ;;  %s2368_s23 = sld [smem:[#allocation4 + $0x28]] }
  0xa5   : > { %3383 = sst [smem:[#allocation59_spill]] %s2356_s11  ;;  %s2370_s3 = sld [smem:[#allocation4 + $0x29]] }
  0xa6   : > { %3384 = sst [smem:[#allocation60_spill]] %s2358_s15  ;;  %s2379_s15 = sld [smem:[#allocation4 + $0x3f]] }
  0xa7   : > { %3385 = sst [smem:[#allocation61_spill]] %s2360_s5  ;;  %s2377_s5 = sld [smem:[#allocation4 + $0x38]]  ;;  %v813_v30 = vstv %s2362_s16 }
  0xa8   : > { %369 = vrot.lane.b32.xlu1 %v335_v53, %s2024_s6  ;;  %367 = vrot.lane.b32.xlu0 %v331_v52, %s2024_s6  ;;  %3386 = sst [smem:[#allocation62_spill]] %s2364_s14  ;;  %s3396_s29 = sld [smem:[#allocation43_spill]]  ;;  %v2484_v42 = vmul.f32 %v813_v30, %v2270_v51 }
  0xa9   : > { %3389 = sst [smem:[#allocation65_spill]] %s2372_s17  ;;  %s2387_s17 = sld [smem:[#allocation4 + $0x4d]] }
  0xaa   : > { %3387 = sst [smem:[#allocation63_spill]] %s2368_s23  ;;  %s2385_s23 = sld [smem:[#allocation4 + $0x32]] }
  0xab   : > { %3388 = sst [smem:[#allocation64_spill]] %s2370_s3  ;;  %s2413_s21 = sld [smem:[#allocation4 + $0x36]] }
  0xac   : > { %423 = vrot.lane.b32.xlu1 %v335_v53, %s2025_s7  ;;  %421 = vrot.lane.b32.xlu0 %v331_v52, %s2025_s7  ;;  %3391 = sst [smem:[#allocation67_spill]] %s2379_s15  ;;  %s2395_s15 = sld [smem:[#allocation4 + $0x35]] }
  0xad   : > { %3390 = sst [smem:[#allocation66_spill]] %s2377_s5  ;;  %s2393_s5 = sld [smem:[#allocation4 + $0x33]] }
  0xae   : > { %3394 = sst [smem:[#allocation70_spill]] %s2401_s4  ;;  %s2415_s1 = sld [smem:[#allocation4 + $0x3a]]  ;;  %v739_v20 = vstv %s3396_s29 }
  0xaf   : > { %3393 = sst [smem:[#allocation69_spill]] %s2387_s17  ;;  %s3399_s30 = sld [smem:[#allocation47_spill]] }
  0xb0   : > { %450 = vrot.lane.b32.xlu1 %v335_v53, %s2026_s8  ;;  %448 = vrot.lane.b32.xlu0 %v331_v52, %s2026_s8  ;;  %3392 = sst [smem:[#allocation68_spill]] %s2385_s23  ;;  %s3401_s28 = sld [smem:[#allocation48_spill]] }
  0xb1   : > { %s2425_s18 = sld [smem:[#allocation4 + $0x41]]  ;;  %s3403_s19 = sld [smem:[#allocation46_spill]] }
  0xb2   : > { %s3404_s26 = sld [smem:[#allocation51_spill]]  ;;  %s3405_s0 = sld [smem:[#allocation52_spill]] }
  0xb3   : > { %s2435_s27 = sld [smem:[#allocation4 + $0x3e]]  ;;  %s2449_s9 = sld [smem:[#allocation4 + $0x40]] }
  0xb4   : > { %477 = vrot.lane.b32.xlu1 %v335_v53, %s2027_s10  ;;  %475 = vrot.lane.b32.xlu0 %v331_v52, %s2027_s10  ;;  %3398 = sst [smem:[#allocation71_spill]] %s2415_s1  ;;  %s2443_s1 = sld [smem:[#allocation4 + $0x3d]] }
  0xb5   : > { %v657_v24 = vstv %s3399_s30  ;;  %s2457_s25 = sld [smem:[#allocation4 + $0x43]]  ;;  %s3416_s29 = sld [smem:[#allocation60_spill]] }
  0xb6   : > { %v751_v25 = vstv %s3401_s28  ;;  %s2467_s28 = sld [smem:[#allocation4 + $0x45]]  ;;  %s2477_s2 = sld [smem:[#allocation4 + $0x44]] }
  0xb7   : > { %3402 = sst [smem:[#allocation73_spill]] %s2425_s18  ;;  %s3410_s18 = sld [smem:[#allocation54_spill]]  ;;  %v579_v26 = vstv %s3403_s19 }
  0xb8   : > { %939 = vrot.lane.b32.xlu1 %v934_v55, %s2023_s22  ;;  %937 = vrot.lane.b32.xlu0 %v930_v56, %s2023_s22  ;;  %s2304_s22 = sld [smem:[#allocation4 + $0x11]]  ;;  %v649_v27 = vstv %s3404_s26  ;;  %v743_v28 = vstv %s3405_s0  ;;  %s2469_s0 = sld [smem:[#allocation4 + $0x50]] }
  0xb9   : > { %3408 = sst [smem:[#allocation74_spill]] %s2435_s27  ;;  %s2486_s30 = sld [smem:[#allocation4 + $0x51]] }
  0xba   : > { %3411 = sst [smem:[#allocation75_spill]] %s2443_s1  ;;  %s2451_s27 = sld [smem:[#allocation4 + $0x42]] }
  0xbb   : > { %s2459_s1 = sld [smem:[#allocation4 + $0x4e]]  ;;  %v875_v40 = vstv %s3416_s29  ;;  %s2495_s11 = sld [smem:[#allocation4 + $0x55]] }
  0xbc   : > { %989 = vrot.lane.b32.xlu1 %v934_v55, %s2022_s20  ;;  %987 = vrot.lane.b32.xlu0 %v930_v56, %s2022_s20  ;;  %s2302_s20 = sld [smem:[#allocation4 + $0xf]]  ;;  %s2503_s29 = sld [smem:[#allocation4 + $0x53]] }
  0xbd   : > { %v583_v32 = vstv %s3410_s18  ;;  %s2497_s24 = sld [smem:[#allocation4 + $0x57]]  ;;  %s2512_s16 = sld [smem:[#allocation4 + $0x52]] }
  0xbe   : > { %v653_v61 = vstv %s2304_s22  ;;  %s2403_s22 = sld [smem:[#allocation4 + $0x34]]  ;;  %s3425_s12 = sld [smem:[#allocation71_spill]]  ;;  %v1326_v53 = vstv %s2469_s0 }
  0xbf   : > { %v2411_v10 = vmul.f32 %v653_v61, %v2270_v51  ;;  %s2522_s18 = sld [smem:[#allocation4 + $0x58]]  ;;  %s2524_s23 = sld [smem:[#allocation4 + $0x59]]  ;;  %v2566_v61 = vmul.f32 %v1326_v53, %v2276_v54 }
  0xc0   : > { %964 = vrot.lane.b32.xlu1 %v934_v55, %s2024_s6  ;;  %962 = vrot.lane.b32.xlu0 %v930_v56, %s2024_s6  ;;  %s2306_s6 = sld [smem:[#allocation4 + $0x1d]]  ;;  %s2532_s4 = sld [smem:[#allocation4 + $0x5e]] }
  0xc1   : > { %3424 = sst [smem:[#allocation77_spill]] %s2495_s11  ;;  %s2553_s3 = sld [smem:[#allocation4 + $0x5f]] }
  0xc2   : > { %3360 = sst [smem:[#allocation36_spill]] %s2302_s20  ;;  %v638_v9 = vstv %s2302_s20  ;;  %s2423_s20 = sld [smem:[#allocation4 + $0x39]] }
  0xc3   : > { %s2551_s17 = sld [smem:[#allocation4 + $0x5d]]  ;;  %s2561_s0 = sld [smem:[#allocation4 + $0x60]] }
  0xc4   : > { %1014 = vrot.lane.b32.xlu1 %v934_v55, %s2025_s7  ;;  %1012 = vrot.lane.b32.xlu0 %v930_v56, %s2025_s7  ;;  %s2308_s7 = sld [smem:[#allocation4 + $0x1f]]  ;;  %v1106_v47 = vstv %s2403_s22  ;;  %s2542_s22 = sld [smem:[#allocation4 + $0x5a]] }
  0xc5   : > { %v2518_v30 = vmul.f32 %v1106_v47, %v2276_v54  ;;  %3431 = sst [smem:[#allocation71_spill]] %s2524_s23  ;;  %s2563_s26 = sld [smem:[#allocation4 + $0x16]] }
  0xc6   : > { %3361 = sst [smem:[#allocation37_spill]] %s2306_s6  ;;  %v732_v13 = vstv %s2306_s6  ;;  %s3407_s6 = sld [smem:[#allocation50_spill]] }
  0xc7   : > { %3435 = sst [smem:[#allocation80_spill]] %s2553_s3  ;;  %s2582_s11 = sld [smem:[#allocation4 + $0x17]] }
  0xc8   : > { %1039 = vrot.lane.b32.xlu1 %v934_v55, %s2026_s8  ;;  %1037 = vrot.lane.b32.xlu0 %v930_v56, %s2026_s8  ;;  %s2310_s8 = sld [smem:[#allocation4 + $0x4]]  ;;  %3400 = sst [smem:[#allocation72_spill]] %s2423_s20 }
  0xc9   : > { %s3426_s14 = sld [smem:[#allocation72_spill]]  ;;  %s2514_s20 = sld [smem:[#allocation4 + $0x56]] }
  0xca   : > { %v747_v1 = vstv %s2308_s7  ;;  %s3395_s7 = sld [smem:[#allocation45_spill]]  ;;  %3433 = sst [smem:[#allocation78_spill]] %s2542_s22 }
  0xcb   : > { %v2421_v14 = vmul.f32 %v747_v1, %v2270_v51  ;;  %v1234_v1 = vstv %s2451_s27  ;;  %s2544_s27 = sld [smem:[#allocation4 + $0x5c]]  ;;  %3436 = sst [smem:[#allocation81_spill]] %s2561_s0 }
  0xcc   : > { %1064 = vrot.lane.b32.xlu1 %v934_v55, %s2027_s10  ;;  %1062 = vrot.lane.b32.xlu0 %v930_v56, %s2027_s10  ;;  %s2312_s10 = sld [smem:[#allocation4 + $0x8]]  ;;  %v591_v29 = vstv %s3407_s6  ;;  %s2479_s6 = sld [smem:[#allocation4 + $0x4f]]  ;;  %v2505_v56 = vld [vmem:[#allocation8] sm:$0x3] }
  0xcd   : > { %vm401_vm5 = vcmp.ge.s32.totalorder %v2505_v56, 1  ;;  %vm347_vm6 = vcmp.ge.s32.totalorder %v2505_v56, 3  ;;  %3437 = sst [smem:[#allocation82_spill]] %s2563_s26  ;;  %vm374_vm8 = vcmp.ge.s32.totalorder %v2505_v56, 2  ;;  %vm428_vm10 = vcmp.lt.s32.totalorder %v2505_v56, 15  ;;  %s3470_s19 = sld [smem:[#allocation59_spill]] }
  0xce   : > { %3362 = sst [smem:[#allocation38_spill]] %s2310_s8  ;;  %v513_v11 = vstv %s2310_s8  ;;  %s2433_s8 = sld [smem:[#allocation4 + $0x3c]]  ;;  %vm455_vm12 = vcmp.lt.s32.totalorder %v2505_v56, 14  ;;  %vm482_vm13 = vcmp.lt.s32.totalorder %v2505_v56, 13 }
  0xcf   : > { %s3473_s23 = sld [smem:[#allocation63_spill]]  ;;  %s2029_s26 = smov 16  }
  0xd0   : > { %v525_v19 = vstv %s3395_s7  ;;  %s3414_s7 = sld [smem:[#allocation57_spill]]  ;;  %s3475_s22 = sld [smem:[#allocation64_spill]] }
  0xd1   : > { %3417 = sst [smem:[#allocation57_spill]] %s2459_s1  ;;  %s2571_s1 = sld [smem:[#allocation4 + $0x18]] }
  0xd2   : > { %3363 = sst [smem:[#allocation39_spill]] %s2312_s10  ;;  %v572_v15 = vstv %s2312_s10  ;;  %s2441_s10 = sld [smem:[#allocation4 + $0x3b]] }
  0xd3   : > { %3434 = sst [smem:[#allocation79_spill]] %s2544_s27  ;;  %s3469_s27 = sld [smem:[#allocation58_spill]] }
  0xd4   : > { %3406 = sst [smem:[#allocation46_spill]] %s2433_s8  ;;  %s2488_s8 = sld [smem:[#allocation4 + $0x54]] }
  0xd5   : > { %s2826_s3 = sld [smem:[#allocation4 + $0x1b]]  ;;  %s3479_s0 = sld [smem:[#allocation65_spill]] }
  0xd6   : > { %v871_v36 = vstv %s3414_s7  ;;  %s2028_s7 = smov 48  }
  0xd7   : > { %v719_v38 = vstv %s2571_s1  ;;  %s3467_s1 = sld [smem:[#allocation61_spill]] }
  0xd8   : > { %v1170_v6 = vstv %s2441_s10  ;;  %s2530_s10 = sld [smem:[#allocation4 + $0x5b]] }
  0xd9   : > { %v2538_v43 = vmul.f32 %v1170_v6, %v2276_v54  ;;  %v2556_v6 = vmul.f32 %v1234_v1, %v2276_v54  ;;  %v1390_v1 = vstv %s2497_s24  ;;  %s2584_s24 = sld [smem:[#allocation4 + $0x19]] }
  0xda   : > { %3423 = sst [smem:[#allocation76_spill]] %s2488_s8  ;;  %s2595_s8 = sld [smem:[#allocation4 + $0x61]] }
  0xde   : > { %3432 = sst [smem:[#allocation72_spill]] %s2530_s10  ;;  %s3468_s10 = sld [smem:[#allocation55_spill]] }
  0xdf   : > { %3438 = sst [smem:[#allocation83_spill]] %s2584_s24  ;;  %s3465_s24 = sld [smem:[#allocation44_spill]] }
 0x112   : > { %v395_v35 = vpop.permute.xlu1 %394  ;;  %v339_v55 = vpop.permute.xlu0 %338 }
 0x116   : > { %v397_v22 = vpop.permute.xlu1 %396  ;;  %v341_v45 = vpop.permute.xlu0 %340 }
 0x117   : > { %v399_v48 = vsel %vm398_vm2, %v395_v35, %v397_v22  ;;  %v400_v52 = vsel %vm398_vm2, %v397_v22, %v395_v35  ;;  %v345_v47 = vsel %vm344_vm3, %v339_v55, %v341_v45  ;;  %v346_v53 = vsel %vm344_vm3, %v341_v45, %v339_v55 }
 0x118   : > { %v404_v31 = vcombine.low %v400_v52, %v399_v48  ;;  %v350_v60 = vcombine.low %v346_v53, %v345_v47  ;;  %v2592_v45 = vmul.f32 %v1390_v1, %v2276_v54  ;;  %v1454_v35 = vstv %s2532_s4  ;;  %s2612_s4 = sld [smem:[#allocation4 + $0x1a]] }
 0x119   : > { %v2652_v53 = vmul.f32 %v719_v38, %v2270_v51 }
 0x11a   : > { %v411_v39 = vrot.slane %v404_v31, %v2256_v37  ;;  %v357_v48 = vrot.slane %v350_v60, %v2256_v37  ;;  %v370_v52 = vpop.permute.xlu1 %369  ;;  %v368_v47 = vpop.permute.xlu0 %367 }
 0x11b   : > { %v372_v44 = vsel %vm371_vm4, %v368_v47, %v370_v52  ;;  %v373_v1 = vsel %vm371_vm4, %v370_v52, %v368_v47  ;;  %v2616_v52 = vmul.f32 %v1454_v35, %v2276_v54 }
 0x11c   : > { %v418_v31 = vrot.slane %v411_v39, %v2256_v37  ;;  %v364_v60 = vrot.slane %v357_v48, %v2256_v37  ;;  %v377_v46 = vcombine.low %v373_v1, %v372_v44 }
 0x11e   : > { %v2622_v39 = vsel %vm401_vm5, %v418_v31, 0.0  ;;  %v2626_v44 = vsel %vm347_vm6, %v364_v60, 0.0  ;;  %v384_v48 = vrot.slane %v377_v46, %v2256_v37  ;;  %v424_v1 = vpop.permute.xlu1 %423  ;;  %v422_v35 = vpop.permute.xlu0 %421 }
 0x11f   : > { %v426_v47 = vsel %vm425_vm7, %v422_v35, %v424_v1  ;;  %v427_v22 = vsel %vm425_vm7, %v424_v1, %v422_v35  ;;  %v504_v46 = vmul.f32 %v503_v58, %v2626_v44  ;;  %v510_v34 = vmul.f32 %v509_v59, %v2622_v39 }
 0x120   : > { %v391_v60 = vrot.slane %v384_v48, %v2256_v37  ;;  %v431_v55 = vcombine.low %v426_v47, %v427_v22  ;;  %v636_v1 = vmul.f32 %v635_v62, %v2626_v44  ;;  %v642_v35 = vmul.f32 %v641_v63, %v2622_v39 }
 0x121   : > { %v730_v62 = vmul.f32 %v729_v0, %v2626_v44  ;;  %v736_v63 = vmul.f32 %v735_v2, %v2622_v39  ;;  %v511_v31 = vadd.f32 %v510_v34, %v504_v46  ;;  %v723_v2 = vstv %s2612_s4 }
 0x122   : > { %v2656_v22 = vsel %vm374_vm8, %v391_v60, 0.0  ;;  %v438_v58 = vrot.slane %v431_v55, %v2256_v37  ;;  %v451_v59 = vpop.permute.xlu1 %450  ;;  %v449_v47 = vpop.permute.xlu0 %448  ;;  %v643_v41 = vadd.f32 %v642_v35, %v636_v1 }
 0x123   : > { %v453_v51 = vsel %vm452_vm9, %v449_v47, %v451_v59  ;;  %v454_v38 = vsel %vm452_vm9, %v451_v59, %v449_v47  ;;  %v507_v55 = vmul.f32 %v506_v7, %v2656_v22  ;;  %v639_v48 = vmul.f32 %v638_v9, %v2656_v22 }
 0x124   : > { %v445_v60 = vrot.slane %v438_v58, %v2256_v37  ;;  %v458_v0 = vcombine.low %v453_v51, %v454_v38  ;;  %v733_v21 = vmul.f32 %v732_v13, %v2656_v22  ;;  %v570_v59 = vmul.f32 %v569_v3, %v2626_v44 }
 0x125   : > { %v576_v7 = vmul.f32 %v575_v5, %v2622_v39  ;;  %v523_v35 = vadd.f32 %v2407_v8, %v507_v55  ;;  %v737_v13 = vadd.f32 %v736_v63, %v730_v62  ;;  %v655_v47 = vadd.f32 %v2411_v10, %v639_v48 }
 0x126   : > { %v2689_v9 = vsel %vm428_vm10, %v445_v60, 0.0  ;;  %v465_v34 = vrot.slane %v458_v0, %v2256_v37  ;;  %v478_v46 = vpop.permute.xlu1 %477  ;;  %v476_v1 = vpop.permute.xlu0 %475  ;;  %v573_v62 = vmul.f32 %v572_v15, %v2656_v22  ;;  %v749_v55 = vadd.f32 %v2421_v14, %v733_v21 }
 0x127   : > { %v480_v58 = vsel %vm479_vm11, %v476_v1, %v478_v46  ;;  %v481_v3 = vsel %vm479_vm11, %v478_v46, %v476_v1  ;;  %v514_v5 = vmul.f32 %v513_v11, %v2689_v9  ;;  %v646_v8 = vmul.f32 %v645_v12, %v2689_v9 }
 0x128   : > { %v472_v51 = vrot.slane %v465_v34, %v2256_v37  ;;  %v485_v38 = vcombine.low %v480_v58, %v481_v3  ;;  %v740_v63 = vmul.f32 %v739_v20, %v2689_v9  ;;  %v577_v60 = vadd.f32 %v576_v7, %v570_v59 }
 0x129   : > { %v580_v10 = vmul.f32 %v579_v26, %v2689_v9  ;;  %v515_v15 = vadd.f32 %v514_v5, %v511_v31  ;;  %v862_v20 = vmul.f32 %v861_v17, %v2626_v44  ;;  %v647_v31 = vadd.f32 %v646_v8, %v643_v41 }
 0x12a   : > { %v2717_v11 = vsel %vm455_vm12, %v472_v51, 0.0  ;;  %v492_v48 = vrot.slane %v485_v38, %v2256_v37  ;;  %v940_v12 = vpop.permute.xlu1 %939  ;;  %v938_v0 = vpop.permute.xlu0 %937  ;;  %v589_v17 = vadd.f32 %v2429_v16, %v573_v62  ;;  %v741_v46 = vadd.f32 %v740_v63, %v737_v13 }
 0x12b   : > { %v941_v14 = vsel %vm344_vm3, %v938_v0, %v940_v12  ;;  %v942_v21 = vsel %vm344_vm3, %v940_v12, %v938_v0  ;;  %v526_v26 = vmul.f32 %v525_v19, %v2717_v11  ;;  %v658_v59 = vmul.f32 %v657_v24, %v2717_v11 }
 0x12c   : > { %v499_v7 = vrot.slane %v492_v48, %v2256_v37  ;;  %v945_v34 = vcombine.low %v942_v21, %v941_v14  ;;  %v752_v1 = vmul.f32 %v751_v25, %v2717_v11  ;;  %v581_v58 = vadd.f32 %v580_v10, %v577_v60 }
 0x12d   : > { %v592_v19 = vmul.f32 %v591_v29, %v2717_v11  ;;  %v527_v5 = vadd.f32 %v526_v26, %v523_v35  ;;  %v659_v13 = vadd.f32 %v658_v59, %v655_v47  ;;  %v868_v47 = vmul.f32 %v867_v18, %v2622_v39 }
 0x12e   : > { %v2743_v24 = vsel %vm482_vm13, %v499_v7, 0.0  ;;  %v952_v3 = vrot.slane %v945_v34, %v2256_v37  ;;  %v990_v41 = vpop.permute.xlu1 %989  ;;  %v988_v16 = vpop.permute.xlu0 %987  ;;  %v753_v10 = vadd.f32 %v752_v1, %v749_v55  ;;  %v872_v48 = vmul.f32 %v871_v36, %v2689_v9 }
 0x12f   : > { %v991_v51 = vsel %vm398_vm2, %v988_v16, %v990_v41  ;;  %v992_v25 = vsel %vm398_vm2, %v990_v41, %v988_v16  ;;  %v518_v29 = vmul.f32 %v517_v23, %v2743_v24  ;;  %v650_v38 = vmul.f32 %v649_v27, %v2743_v24 }
 0x130   : > { %v995_v8 = vcombine.low %v992_v25, %v991_v51  ;;  %v744_v62 = vmul.f32 %v743_v28, %v2743_v24  ;;  %v584_v35 = vmul.f32 %v583_v32, %v2743_v24  ;;  %v593_v28 = vadd.f32 %v592_v19, %v589_v17 }
 0x131   : > { %v519_v63 = vadd.f32 %v518_v29, %v515_v15  ;;  %v651_v60 = vadd.f32 %v650_v38, %v647_v31  ;;  %v959_v21 = vrot.slane %v952_v3, %v2256_v37  ;;  %v869_v59 = vadd.f32 %v868_v47, %v862_v20 }
 0x132   : > { %v1002_v23 = vrot.slane %v995_v8, %v2256_v37  ;;  %v965_v12 = vpop.permute.xlu1 %964  ;;  %v963_v27 = vpop.permute.xlu0 %962  ;;  %v745_v0 = vadd.f32 %v744_v62, %v741_v46  ;;  %v585_v14 = vadd.f32 %v584_v35, %v581_v58  ;;  %v876_v17 = vmul.f32 %v875_v40, %v2743_v24 }
 0x133   : > { %v966_v18 = vsel %vm371_vm4, %v963_v27, %v965_v12  ;;  %v967_v32 = vsel %vm371_vm4, %v965_v12, %v963_v27  ;;  %v528_v55 = vadd.f32 %v527_v5, %v519_v63  ;;  %v660_v36 = vadd.f32 %v659_v13, %v651_v60 }
 0x134   : > { %v970_v15 = vcombine.low %v967_v32, %v966_v18  ;;  %v754_v26 = vadd.f32 %v753_v10, %v745_v0  ;;  %v2776_v31 = vadd.f32 %v593_v28, %v585_v14  ;;  %v1009_v46 = vrot.slane %v1002_v23, %v2256_v37 }
 0x135   : > { %v537_v7 = vrot.slane %v528_v55, %v2268_v50  ;;  %v533_v34 = vrot.slane %v528_v55, %v2266_v49  ;;  %v3466_v3 = vstv %s3465_s24  ;;  %v873_v16 = vadd.f32 %v872_v48, %v869_v59  ;;  %s3481_s24 = sld [smem:[#allocation68_spill]] }
 0x136   : > { %v977_v1 = vrot.slane %v970_v15, %v2256_v37  ;;  %v1015_v58 = vpop.permute.xlu1 %1014  ;;  %v1013_v19 = vpop.permute.xlu0 %1012  ;;  %v865_v41 = vmul.f32 %v3466_v3, %v2656_v22  ;;  %v2788_v20 = vsel %vm347_vm6, %v959_v21, 0.0  ;;  %v669_v13 = vrot.slane %v660_v36, %v2268_v50 }
 0x137   : > { %v1016_v5 = vsel %vm425_vm7, %v1013_v19, %v1015_v58  ;;  %v1017_v40 = vsel %vm425_vm7, %v1015_v58, %v1013_v19  ;;  %542 = vrot.lane.b32.xlu1 %v537_v7, %s2028_s7  ;;  %540 = vrot.lane.b32.xlu0 %v533_v34, %s2028_s7  ;;  %v665_v29 = vrot.slane %v660_v36, %v2266_v49  ;;  %v3471_v23 = vstv %s3467_s1  ;;  %s3482_s1 = sld [smem:[#allocation66_spill]] }
 0x138   : > { %v984_v51 = vrot.slane %v977_v1, %v2256_v37  ;;  %v1020_v25 = vcombine.low %v1016_v5, %v1017_v40  ;;  %v763_v38 = vrot.slane %v754_v26, %v2268_v50  ;;  %v759_v8 = vrot.slane %v754_v26, %v2266_v49 }
 0x139   : > { %v603_v62 = vrot.slane %v2776_v31, %v2268_v50  ;;  %v599_v35 = vrot.slane %v2776_v31, %v2266_v49  ;;  %v877_v47 = vadd.f32 %v876_v17, %v873_v16  ;;  %v881_v48 = vadd.f32 %v2464_v33, %v865_v41 }
 0x13a   : > { %v1027_v63 = vrot.slane %v1020_v25, %v2256_v37  ;;  %v1040_v60 = vpop.permute.xlu1 %1039  ;;  %v1038_v10 = vpop.permute.xlu0 %1037  ;;  %v884_v12 = vmul.f32 %v3471_v23, %v2717_v11  ;;  %v3472_v27 = vstv %s3468_s10  ;;  %v2815_v14 = vsel %vm401_vm5, %v1009_v46, 0.0  ;;  %s2857_s10 = sld [smem:[#allocation4 + $0x49]] }
 0x13b   : > { %v796_v0 = vmul.f32 %v3472_v27, %v2626_v44  ;;  %v1041_v28 = vsel %vm452_vm9, %v1038_v10, %v1040_v60  ;;  %v1042_v21 = vsel %vm452_vm9, %v1040_v60, %v1038_v10  ;;  %674 = vrot.lane.b32.xlu1 %v669_v13, %s2029_s26  ;;  %672 = vrot.lane.b32.xlu0 %v665_v29, %s2029_s26  ;;  %v3474_v33 = vstv %s3469_s27  ;;  %s3488_s27 = sld [smem:[#allocation46_spill]] }
 0x13c   : > { %v799_v18 = vmul.f32 %v3474_v33, %v2656_v22  ;;  %v1034_v32 = vrot.slane %v1027_v63, %v2256_v37  ;;  %v1045_v55 = vcombine.low %v1041_v28, %v1042_v21  ;;  %v885_v15 = vadd.f32 %v884_v12, %v881_v48 }
 0x13d   : > { %v3476_v36 = vstv %s3470_s19  ;;  %v2834_v59 = vsel %vm374_vm8, %v984_v51, 0.0  ;;  %v3477_v7 = vstv %s2366_s13  ;;  %v3478_v17 = vstv %s3473_s23  ;;  %s2030_s13 = smov 112   ;;  %s3489_s19 = sld [smem:[#allocation75_spill]] }
 0x13e   : > { %v802_v26 = vmul.f32 %v3476_v36, %v2622_v39  ;;  %v806_v34 = vmul.f32 %v3477_v7, %v2689_v9  ;;  %v815_v31 = vadd.f32 %v2484_v42, %v799_v18  ;;  %v818_v46 = vmul.f32 %v3478_v17, %v2717_v11  ;;  %v1065_v58 = vpop.permute.xlu1 %1064  ;;  %v1063_v19 = vpop.permute.xlu0 %1062  ;;  %s2031_s23 = smov 32  }
 0x13f   : > { %v1052_v1 = vrot.slane %v1045_v55, %v2256_v37  ;;  %v886_v3 = vadd.f32 %v885_v15, %v877_v47  ;;  %v3480_v16 = vstv %s3475_s22  ;;  %v2849_v40 = vsel %vm428_vm10, %v1034_v32, 0.0  ;;  %768 = vrot.lane.b32.xlu1 %v763_v38, %s2030_s13  ;;  %766 = vrot.lane.b32.xlu0 %v759_v8, %s2030_s13  ;;  %s3495_s22 = sld [smem:[#allocation74_spill]] }
 0x140   : > { %v803_v41 = vadd.f32 %v802_v26, %v796_v0  ;;  %v810_v5 = vmul.f32 %v3480_v16, %v2743_v24  ;;  %v1066_v42 = vsel %vm479_vm11, %v1063_v19, %v1065_v58  ;;  %v1067_v13 = vsel %vm479_vm11, %v1065_v58, %v1063_v19 }
 0x141   : > { %v819_v51 = vadd.f32 %v818_v46, %v815_v31  ;;  %v1059_v25 = vrot.slane %v1052_v1, %v2256_v37  ;;  %v1070_v29 = vcombine.low %v1066_v42, %v1067_v13  ;;  %v895_v47 = vrot.slane %v886_v3, %v2268_v50 }
 0x142   : > { %v891_v63 = vrot.slane %v886_v3, %v2266_v49  ;;  %v807_v60 = vadd.f32 %v806_v34, %v803_v41  ;;  %v3483_v10 = vstv %s3479_s0  ;;  %v3484_v23 = vstv %s3481_s24  ;;  %s3499_s0 = sld [smem:[#allocation69_spill]]  ;;  %s2916_s24 = sld [smem:[#allocation4 + $0x4a]] }
 0x143   : > { %v1089_v48 = vmul.f32 %v3483_v10, %v2788_v20  ;;  %v1092_v38 = vmul.f32 %v3484_v23, %v2834_v59  ;;  %v3485_v8 = vstv %s2393_s5  ;;  %v2873_v27 = vsel %vm455_vm12, %v1059_v25, 0.0  ;;  %608 = vrot.lane.b32.xlu1 %v603_v62, %s2031_s23  ;;  %606 = vrot.lane.b32.xlu0 %v599_v35, %s2031_s23  ;;  %s2886_s5 = sld [smem:[#allocation4 + $0x47]] }
 0x144   : > { %v1095_v12 = vmul.f32 %v3485_v8, %v2815_v14  ;;  %v1077_v0 = vrot.slane %v1070_v29, %v2256_v37  ;;  %v3486_v28 = vstv %s2395_s15  ;;  %v3487_v33 = vstv %s3482_s1  ;;  %s3492_s15 = sld [smem:[#allocation70_spill]]  ;;  %s3505_s1 = sld [smem:[#allocation57_spill]] }
 0x145   : > { %v1099_v21 = vmul.f32 %v3486_v28, %v2849_v40  ;;  %v1153_v18 = vmul.f32 %v3487_v33, %v2788_v20  ;;  %v811_v32 = vadd.f32 %v810_v5, %v807_v60  ;;  %v1108_v15 = vadd.f32 %v2518_v30, %v1092_v38 }
 0x146   : > { %v1096_v55 = vadd.f32 %v1095_v12, %v1089_v48  ;;  %v715_v36 = vstv %s2826_s3  ;;  %v1084_v26 = vrot.slane %v1077_v0, %v2256_v37  ;;  %v3490_v7 = vstv %s2413_s21  ;;  %s3497_s21 = sld [smem:[#allocation67_spill]] }
 0x147   : > { %v1111_v34 = vmul.f32 %v3490_v7, %v2873_v27  ;;  %v3491_v31 = vstv %s3426_s14  ;;  %v3493_v62 = vstv %s3425_s12  ;;  %v820_v35 = vadd.f32 %v819_v51, %v811_v32  ;;  %s3498_s12 = sld [smem:[#allocation73_spill]]  ;;  %s2032_s14 = smov 80  }
 0x148   : > { %v1156_v17 = vmul.f32 %v3491_v31, %v2834_v59  ;;  %v1159_v46 = vmul.f32 %v3493_v62, %v2815_v14  ;;  %v1100_v1 = vadd.f32 %v1099_v21, %v1096_v55  ;;  %v3494_v30 = vstv %s3488_s27  ;;  %900 = vrot.lane.b32.xlu1 %v895_v47, %s2032_s14  ;;  %898 = vrot.lane.b32.xlu0 %v891_v63, %s2032_s14  ;;  %s2974_s27 = sld [smem:[#allocation4 + $0x4c]] }
 0x149   : > { %v1163_v58 = vmul.f32 %v3494_v30, %v2849_v40  ;;  %v3496_v19 = vstv %s3489_s19  ;;  %v2906_v41 = vsel %vm482_vm13, %v1084_v26, 0.0  ;;  %v1112_v16 = vadd.f32 %v1111_v34, %v1108_v15  ;;  %s3532_s19 = sld [smem:[#allocation82_spill]] }
 0x14a   : > { %v1175_v3 = vmul.f32 %v3496_v19, %v2873_v27  ;;  %v1160_v5 = vadd.f32 %v1159_v46, %v1153_v18  ;;  %v1172_v42 = vadd.f32 %v2538_v43, %v1156_v17  ;;  %v829_v13 = vrot.slane %v820_v35, %v2268_v50 }
 0x14b   : > { %v825_v56 = vrot.slane %v820_v35, %v2266_v49  ;;  %v3500_v51 = vstv %s3492_s15  ;;  %v1298_v29 = vstv %s2857_s10  ;;  %v3501_v60 = vstv %s3495_s22  ;;  %s3519_s10 = sld [smem:[#allocation56_spill]]  ;;  %s3540_s15 = sld [smem:[#allocation53_spill]] }
 0x14c   : > { %v1103_v25 = vmul.f32 %v3500_v51, %v2906_v41  ;;  %v1164_v43 = vadd.f32 %v1163_v58, %v1160_v5  ;;  %v1167_v10 = vmul.f32 %v3501_v60, %v2906_v41  ;;  %v1176_v47 = vadd.f32 %v1175_v3, %v1172_v42 }
 0x14d   : > { %v3502_v48 = vstv %s3497_s21  ;;  %v3503_v38 = vstv %s2449_s9  ;;  %v3504_v12 = vstv %s3498_s12  ;;  %v3506_v28 = vstv %s2457_s25  ;;  %s2033_s9 = smov 96   ;;  %s2947_s25 = sld [smem:[#allocation4 + $0x4b]] }
 0x14e   : > { %v1217_v63 = vmul.f32 %v3502_v48, %v2788_v20  ;;  %v1104_v23 = vadd.f32 %v1103_v25, %v1100_v1  ;;  %v1220_v8 = vmul.f32 %v3503_v38, %v2834_v59  ;;  %v1223_v0 = vmul.f32 %v3504_v12, %v2815_v14  ;;  %834 = vrot.lane.b32.xlu1 %v829_v13, %s2033_s9  ;;  %s3549_s21 = sld [smem:[#allocation87_spill]] }
 0x14f   : > { %v1227_v21 = vmul.f32 %v3506_v28, %v2849_v40  ;;  %v1168_v33 = vadd.f32 %v1167_v10, %v1164_v43  ;;  %v3507_v18 = vstv %s2467_s28  ;;  %v3508_v55 = vstv %s2477_s2  ;;  %832 = vrot.lane.b32.xlu0 %v825_v56, %s2033_s9  ;;  %s3513_s2 = sld [smem:[#allocation76_spill]]  ;;  %s3514_s28 = sld [smem:[#allocation77_spill]] }
 0x150   : > { %v1231_v32 = vmul.f32 %v3507_v18, %v2906_v41  ;;  %v1239_v15 = vmul.f32 %v3508_v55, %v2873_v27  ;;  %v3509_v26 = vstv %s3499_s0  ;;  %v1113_v34 = vadd.f32 %v1112_v16, %v1104_v23 }
 0x151   : > { %v1309_v7 = vmul.f32 %v3509_v26, %v2788_v20  ;;  %v1224_v31 = vadd.f32 %v1223_v0, %v1217_v63  ;;  %v1236_v17 = vadd.f32 %v2556_v6, %v1220_v8  ;;  %v1283_v62 = vstv %s2886_s5 }
 0x152   : > { %v1177_v46 = vadd.f32 %v1176_v47, %v1168_v33  ;;  %v3510_v35 = vstv %s3505_s1  ;;  %v3511_v30 = vstv %s2479_s6  ;;  %v3512_v19 = vstv %s2486_s30  ;;  %s3516_s30 = sld [smem:[#allocation78_spill]]  ;;  %s3517_s6 = sld [smem:[#allocation71_spill]] }
 0x153   : > { %v1312_v1 = vmul.f32 %v3510_v35, %v2834_v59  ;;  %v1315_v58 = vmul.f32 %v3511_v30, %v2815_v14  ;;  %v1319_v3 = vmul.f32 %v3512_v19, %v2849_v40  ;;  %v1122_v16 = vrot.slane %v1113_v34, %v2268_v50 }
 0x154   : > { %v1118_v6 = vrot.slane %v1113_v34, %v2266_v49  ;;  %v1228_v5 = vadd.f32 %v1227_v21, %v1224_v31  ;;  %v2961_v42 = vmul.f32 %v1298_v29, %v2276_v54  ;;  %v1186_v13 = vrot.slane %v1177_v46, %v2268_v50 }
 0x155   : > { %v1240_v56 = vadd.f32 %v1239_v15, %v1236_v17  ;;  %v1316_v51 = vadd.f32 %v1315_v58, %v1309_v7  ;;  %v3515_v25 = vstv %s2503_s29  ;;  %1127 = vrot.lane.b32.xlu1 %v1122_v16, %s2028_s7  ;;  %v1328_v10 = vadd.f32 %v2566_v61, %v1312_v1  ;;  %s3523_s29 = sld [smem:[#allocation79_spill]] }
 0x156   : > { %v1323_v43 = vmul.f32 %v3515_v25, %v2906_v41  ;;  %1125 = vrot.lane.b32.xlu0 %v1118_v6, %s2028_s7  ;;  %v1232_v60 = vadd.f32 %v1231_v32, %v1228_v5  ;;  %v3518_v54 = vstv %s2512_s16  ;;  %v1290_v47 = vstv %s2916_s24  ;;  %s3525_s16 = sld [smem:[#allocation72_spill]]  ;;  %s2034_s24 = smov [#allocation11]  }
 0x157   : > { %v1331_v29 = vmul.f32 %v3518_v54, %v2873_v27  ;;  %v1320_v48 = vadd.f32 %v1319_v3, %v1316_v51  ;;  %v3520_v63 = vstv %s3513_s2  ;;  %v3521_v38 = vstv %s3514_s28  ;;  %s3527_s7 = sld [smem:[#allocation80_spill]]  ;;  %s1926_s1 = sshll.u32 %s2034_s24, 4  ;;  %s1927_s1 = int_to_ptr.vmem [resolvable:$false] %s1926_s1 }
 0x158   : > { %v1373_v23 = vmul.f32 %v3520_v63, %v2788_v20  ;;  %v1376_v8 = vmul.f32 %v3521_v38, %v2834_v59  ;;  %v3522_v12 = vstv %s2514_s20  ;;  %v1182_v61 = vrot.slane %v1177_v46, %v2266_v49  ;;  %s3531_s20 = sld [smem:[#allocation62_spill]] }
 0x159   : > { %v1379_v0 = vmul.f32 %v3522_v12, %v2815_v14  ;;  %v1241_v28 = vadd.f32 %v1240_v56, %v1232_v60  ;;  %v1332_v21 = vadd.f32 %v1331_v29, %v1328_v10  ;;  %v3524_v33 = vstv %s2522_s18  ;;  %1191 = vrot.lane.b32.xlu1 %v1186_v13, %s2031_s23  ;;  %s3530_s18 = sld [smem:[#allocation81_spill]] }
 0x15a   : > { %v1383_v18 = vmul.f32 %v3524_v33, %v2849_v40  ;;  %v1324_v32 = vadd.f32 %v1323_v43, %v1320_v48  ;;  %v3526_v15 = vstv %s3516_s30  ;;  %v3528_v7 = vstv %s3517_s6  ;;  %1189 = vrot.lane.b32.xlu0 %v1182_v61, %s2031_s23  ;;  %s3536_s23 = sld [smem:[#allocation83_spill]] }
 0x15b   : > { %v1380_v55 = vadd.f32 %v1379_v0, %v1373_v23  ;;  %v1387_v26 = vmul.f32 %v3526_v15, %v2906_v41  ;;  %v1395_v34 = vmul.f32 %v3528_v7, %v2873_v27  ;;  %v3529_v31 = vstv %s3519_s10 }
 0x15c   : > { %v1287_v17 = vmul.f32 %v3529_v31, %v2815_v14  ;;  %v1250_v46 = vrot.slane %v1241_v28, %v2268_v50  ;;  %v1392_v35 = vadd.f32 %v2592_v45, %v1376_v8  ;;  %v1302_v1 = vstv %s2947_s25 }
 0x15d   : > { %v1246_v30 = vrot.slane %v1241_v28, %v2266_v49  ;;  %v1333_v58 = vadd.f32 %v1332_v21, %v1324_v32  ;;  %v1384_v19 = vadd.f32 %v1383_v18, %v1380_v55  ;;  %v3533_v3 = vstv %s3523_s29 }
 0x15e   : > { %v1440_v16 = vmul.f32 %v3533_v3, %v2834_v59  ;;  %v1396_v6 = vadd.f32 %v1395_v34, %v1392_v35  ;;  %v3534_v5 = vstv %s3525_s16  ;;  %v3535_v56 = vstv %s2551_s17  ;;  %1255 = vrot.lane.b32.xlu1 %v1250_v46, %s2029_s26  ;;  %s3546_s17 = sld [smem:[#allocation26_spill]] }
 0x15f   : > { %v1437_v13 = vmul.f32 %v3534_v5, %v2788_v20  ;;  %v1443_v45 = vmul.f32 %v3535_v56, %v2815_v14  ;;  %v3537_v51 = vstv %s3527_s7  ;;  %v1342_v43 = vrot.slane %v1333_v58, %v2268_v50  ;;  %1253 = vrot.lane.b32.xlu0 %v1246_v30, %s2029_s26 }
 0x160   : > { %v1447_v25 = vmul.f32 %v3537_v51, %v2849_v40  ;;  %v1388_v60 = vadd.f32 %v1387_v26, %v1384_v19  ;;  %v3538_v10 = vstv %s2595_s8  ;;  %v3539_v29 = vstv %s3530_s18  ;;  %s3548_s8 = sld [smem:[#allocation24_spill]] }
 0x161   : > { %v1451_v54 = vmul.f32 %v3538_v10, %v2906_v41  ;;  %v1459_v48 = vmul.f32 %v3539_v29, %v2873_v27  ;;  %v1444_v14 = vadd.f32 %v1443_v45, %v1437_v13  ;;  %v3541_v63 = vstv %s3531_s20 }
 0x162   : > { %v702_v23 = vmul.f32 %v3541_v63, %v2626_v44  ;;  %v3542_v38 = vstv %s3532_s19  ;;  %v1294_v12 = vstv %s2974_s27  ;;  %v1397_v0 = vadd.f32 %v1396_v6, %v1388_v60  ;;  %1347 = vrot.lane.b32.xlu1 %v1342_v43, %s2030_s13 }
 0x163   : > { %v705_v8 = vmul.f32 %v3542_v38, %v2656_v22  ;;  %v1456_v61 = vadd.f32 %v2616_v52, %v1440_v16  ;;  %v3543_v28 = vstv %s2582_s11  ;;  %v3544_v33 = vstv %s3536_s23  ;;  %s3547_s11 = sld [smem:[#allocation19_spill]] }
 0x164   : > { %v708_v21 = vmul.f32 %v3543_v28, %v2622_v39  ;;  %v712_v18 = vmul.f32 %v3544_v33, %v2689_v9  ;;  %v1338_v32 = vrot.slane %v1333_v58, %v2266_v49  ;;  %v1448_v55 = vadd.f32 %v1447_v25, %v1444_v14  ;;  %v3099_v28 = vld [vmem:[#allocation8 + $0x2] sm:$0x3]  ;;  %s1640_s4 = sshll.u32 %s3546_s17, 1 }
 0x165   : > { %v721_v15 = vadd.f32 %v2652_v53, %v705_v8  ;;  %v724_v44 = vmul.f32 %v723_v2, %v2717_v11  ;;  %v3545_v22 = vstv %s3540_s15  ;;  %v1460_v7 = vadd.f32 %v1459_v48, %v1456_v61  ;;  %s229_s3 = scalar_lea.vmem [#allocation11], %s1640_s4 }
 0x166   : > { %v1281_v26 = vmul.f32 %v3545_v22, %v2788_v20  ;;  %v709_v52 = vadd.f32 %v708_v21, %v702_v23  ;;  %v716_v39 = vmul.f32 %v715_v36, %v2743_v24  ;;  %1345 = vrot.lane.b32.xlu0 %v1338_v32, %s2030_s13  ;;  %v1406_v9 = vrot.slane %v1397_v0, %v2268_v50  ;;  %s1522_s13 = sshll.u32 %s229_s3, 4  ;;  %p3550_p2 = scmp.ne.s32.totalorder %s3548_s8, 0  ;;  %s3190_s13 = int_to_ptr.vmem [resolvable:$true] %s1522_s13 }
 0x167   : > { %v1452_v34 = vadd.f32 %v1451_v54, %v1448_v55  ;;  %v725_v31 = vadd.f32 %v724_v44, %v721_v15  ;;  %v1284_v2 = vmul.f32 %v1283_v62, %v2834_v59  ;;  %v1291_v20 = vmul.f32 %v1290_v47, %v2849_v40  ;;  %s1922_s0 = scalar_lea.vmem %s3190_s13, 32  ;;  %p1929_p9 = scmp.lt.s32.totalorder %s3190_s13, %s1927_s1 }
 0x168   : > { %v713_v53 = vadd.f32 %v712_v18, %v709_v52  ;;  %v1288_v11 = vadd.f32 %v1287_v17, %v1281_v26  ;;  %v1402_v46 = vrot.slane %v1397_v0, %v2266_v49  ;;  %v1295_v24 = vmul.f32 %v1294_v12, %v2906_v41  ;;  %1411 = vrot.lane.b32.xlu1 %v1406_v9, %s2033_s9  ;;  %p1923_p0 = scmp.ne.s32.totalorder %s3190_s13, %s1922_s0 }
 0x169   : > { %v1461_v35 = vadd.f32 %v1460_v7, %v1452_v34  ;;  %v1303_v36 = vmul.f32 %v1302_v1, %v2873_v27  ;;  %v1300_v19 = vadd.f32 %v2961_v42, %v1284_v2  ;;  %vm544_vm2 = vcmp.lt.s32.totalorder %v2375_v57, 48  ;;  %s1745_s26 = sshll.u32 %s3547_s11, 5 }
 0x16a   : > { %v717_v30 = vadd.f32 %v716_v39, %v713_v53  ;;  %v1292_v58 = vadd.f32 %v1291_v20, %v1288_v11  ;;  %1409 = vrot.lane.b32.xlu0 %v1402_v46, %s2033_s9  ;;  %vm770_vm3 = vcmp.lt.s32.totalorder %v2375_v57, 112  ;;  %vm902_vm4 = vcmp.lt.s32.totalorder %v2375_v57, 80  ;;  %s3188_s12 = scalar_lea.hbm %s3549_s21, %s1745_s26  ;;  %p1924_p10 = pnand %p1923_p0, %p3550_p2 }
 0x16b   : > { %v1304_v62 = vadd.f32 %v1303_v36, %v1300_v19  ;;  %v1470_v40 = vrot.slane %v1461_v35, %v2268_v50  ;;  %v1466_v47 = vrot.slane %v1461_v35, %v2266_v49  ;;  %vm613_vm5 = vcmp.ge.s32.totalorder %v3099_v28, 2  ;;  %s1928_s9 = scalar_lea.vmem %s1927_s1, 64 }
 0x16c   : > { %v3063_v3 = vadd.f32 %v725_v31, %v717_v30  ;;  %v1296_v59 = vadd.f32 %v1295_v24, %v1292_v58  ;;  %vm839_vm6 = vcmp.lt.s32.totalorder %v3099_v28, 14  ;;  %vm547_vm7 = vcmp.ge.s32.totalorder %v3099_v28, 3  ;;  %p1925_p6 = pneg %p1924_p10  ;;  %p1930_p13 = scmp.lt.s32.totalorder %s1928_s9, %s1922_s0 }
 0x16d   : > { %1475 = vrot.lane.b32.xlu1 %v1470_v40, %s2032_s14  ;;  %vm679_vm8 = vcmp.ge.s32.totalorder %v3099_v28, 1  ;;  %vm773_vm9 = vcmp.lt.s32.totalorder %v3099_v28, 15  ;;  %vm905_vm10 = vcmp.lt.s32.totalorder %v3099_v28, 13 }
 0x16e   : > { %v3067_v17 = vadd.f32 %v1304_v62, %v1296_v59  ;;  %1473 = vrot.lane.b32.xlu0 %v1466_v47, %s2032_s14  ;;  %s1508_s14 = scalar_lea.sflag [#allocation6], %s3546_s17  ;;  %p1931_p3 = por %p1930_p13, %p1929_p9 }
 0x170   : > { %p1932_p11 = pnand %p1931_p3, %p1925_p6 }
 0x1a9   : > { %v543_v27 = vpop.permute.xlu1 %542  ;;  %v541_v41 = vpop.permute.xlu0 %540 }
 0x1aa   : > { %v545_v63 = vsel %vm544_vm2, %v541_v41, %v543_v27  ;;  %v546_v23 = vsel %vm544_vm2, %v543_v27, %v541_v41 }
 0x1ab   : > { %v550_v18 = vcombine.low %v546_v23, %v545_v63 }
 0x1ad   : > { %v675_v42 = vpop.permute.xlu1 %674  ;;  %v673_v1 = vpop.permute.xlu0 %672  ;;  %v557_v11 = vrot.slane %v550_v18, %v2256_v37 }
 0x1ae   : > { %v677_v48 = vsel %vm676_vm0, %v673_v1, %v675_v42  ;;  %v678_v14 = vsel %vm676_vm0, %v675_v42, %v673_v1 }
 0x1af   : > { %v682_v21 = vcombine.low %v678_v14, %v677_v48 }
 0x1b1   : > { %v769_v16 = vpop.permute.xlu1 %768  ;;  %v767_v6 = vpop.permute.xlu0 %766  ;;  %v689_v34 = vrot.slane %v682_v21, %v2256_v37 }
 0x1b2   : > { %v771_v0 = vsel %vm770_vm3, %v767_v6, %v769_v16  ;;  %v772_v61 = vsel %vm770_vm3, %v769_v16, %v767_v6 }
 0x1b3   : > { %v776_v15 = vcombine.low %v771_v0, %v772_v61  ;;  %v696_v62 = vrot.slane %v689_v34, %v2256_v37 }
 0x1b5   : > { %v609_v5 = vpop.permute.xlu1 %608  ;;  %v607_v13 = vpop.permute.xlu0 %606  ;;  %v783_v20 = vrot.slane %v776_v15, %v2256_v37 }
 0x1b6   : > { %v611_v50 = vsel %vm610_vm14, %v607_v13, %v609_v5  ;;  %v612_v49 = vsel %vm610_vm14, %v609_v5, %v607_v13 }
 0x1b7   : > { %v616_v51 = vcombine.low %v612_v49, %v611_v50  ;;  %v790_v42 = vrot.slane %v783_v20, %v2256_v37 }
 0x1b9   : > { %v623_v54 = vrot.slane %v616_v51, %v2256_v37 }
 0x1ba   : > { %v901_v56 = vpop.permute.xlu1 %900  ;;  %v899_v45 = vpop.permute.xlu0 %898 }
 0x1bb   : > { %v630_v33 = vrot.slane %v623_v54, %v2256_v37  ;;  %v903_v32 = vsel %vm902_vm4, %v899_v45, %v901_v56  ;;  %v904_v55 = vsel %vm902_vm4, %v901_v56, %v899_v45  ;;  %v698_v56 = vsel %vm679_vm8, %v696_v62, 0.0 }
 0x1bc   : > { %v908_v53 = vcombine.low %v903_v32, %v904_v55 }
 0x1bd   : > { %v632_v31 = vsel %vm613_vm5, %v630_v33, 0.0 }
 0x1be   : > { %v727_v58 = vadd.f32 %v3063_v3, %v632_v31  ;;  %v915_v40 = vrot.slane %v908_v53, %v2256_v37  ;;  %v564_v3 = vrot.slane %v557_v11, %v2256_v37 }
 0x1c0   : > { %v835_v25 = vpop.permute.xlu1 %834  ;;  %v922_v45 = vrot.slane %v915_v40, %v2256_v37 }
 0x1c1   : > { %v833_v43 = vpop.permute.xlu0 %832 }
 0x1c2   : > { %v837_v60 = vsel %vm836_vm15, %v833_v43, %v835_v25  ;;  %v838_v10 = vsel %vm836_vm15, %v835_v25, %v833_v43 }
 0x1c3   : > { %v842_v29 = vcombine.low %v837_v60, %v838_v10  ;;  %v566_v60 = vsel %vm547_vm7, %v564_v3, 0.0  ;;  %v792_v10 = vsel %vm773_vm9, %v790_v42, 0.0 }
 0x1c4   : > { %v699_v63 = vadd.f32 %v698_v56, %v566_v60 }
 0x1c5   : > { %v849_v38 = vrot.slane %v842_v29, %v2256_v37 }
 0x1c6   : > { %v793_v0 = vadd.f32 %v792_v10, %v699_v63 }
 0x1c7   : > { %v1128_v8 = vpop.permute.xlu1 %1127  ;;  %v856_v44 = vrot.slane %v849_v38, %v2256_v37 }
 0x1c8   : > { %v1126_v12 = vpop.permute.xlu0 %1125 }
 0x1c9   : > { %v1129_v7 = vsel %vm544_vm2, %v1126_v12, %v1128_v8  ;;  %v1130_v52 = vsel %vm544_vm2, %v1128_v8, %v1126_v12  ;;  %v858_v46 = vsel %vm839_vm6, %v856_v44, 0.0 }
 0x1ca   : > { %v1133_v35 = vcombine.low %v1130_v52, %v1129_v7  ;;  %v859_v41 = vadd.f32 %v858_v46, %v727_v58 }
 0x1cb   : > { %v1192_v22 = vpop.permute.xlu1 %1191 }
 0x1cc   : > { %v1190_v26 = vpop.permute.xlu0 %1189  ;;  %v1140_v1 = vrot.slane %v1133_v35, %v2256_v37 }
 0x1cd   : > { %v1193_v39 = vsel %vm610_vm14, %v1190_v26, %v1192_v22  ;;  %v1194_v9 = vsel %vm610_vm14, %v1192_v22, %v1190_v26 }
 0x1ce   : > { %v1197_v2 = vcombine.low %v1194_v9, %v1193_v39  ;;  %v1147_v54 = vrot.slane %v1140_v1, %v2256_v37 }
 0x1d0   : > { %v1204_v24 = vrot.slane %v1197_v2, %v2256_v37  ;;  %v1256_v36 = vpop.permute.xlu1 %1255  ;;  %v1149_v61 = vsel %vm547_vm7, %v1147_v54, 0.0 }
 0x1d1   : > { %v1254_v30 = vpop.permute.xlu0 %1253 }
 0x1d2   : > { %v1257_v19 = vsel %vm676_vm0, %v1254_v30, %v1256_v36  ;;  %v1258_v59 = vsel %vm676_vm0, %v1256_v36, %v1254_v30  ;;  %v1211_v47 = vrot.slane %v1204_v24, %v2256_v37 }
 0x1d3   : > { %v1261_v27 = vcombine.low %v1258_v59, %v1257_v19 }
 0x1d4   : > { %v1213_v16 = vsel %vm613_vm5, %v1211_v47, 0.0  ;;  %v1348_v6 = vpop.permute.xlu1 %1347 }
 0x1d5   : > { %v1214_v13 = vadd.f32 %v1213_v16, %v859_v41  ;;  %v1268_v51 = vrot.slane %v1261_v27, %v2256_v37 }
 0x1d7   : > { %v1306_v43 = vadd.f32 %v3067_v17, %v1214_v13  ;;  %v924_v17 = vsel %vm905_vm10, %v922_v45, 0.0  ;;  %v1275_v8 = vrot.slane %v1268_v51, %v2256_v37 }
 0x1d8   : > { %v1346_v5 = vpop.permute.xlu0 %1345  ;;  %v925_v55 = vadd.f32 %v924_v17, %v793_v0 }
 0x1d9   : > { %v1349_v50 = vsel %vm770_vm3, %v1346_v5, %v1348_v6  ;;  %v1350_v49 = vsel %vm770_vm3, %v1348_v6, %v1346_v5  ;;  %v1277_v22 = vsel %vm679_vm8, %v1275_v8, 0.0 }
 0x1da   : > { %v1353_v25 = vcombine.low %v1349_v50, %v1350_v49  ;;  %v1412_v48 = vpop.permute.xlu1 %1411  ;;  %v1150_v52 = vadd.f32 %v1149_v61, %v925_v55 }
 0x1dc   : > { %v1360_v29 = vrot.slane %v1353_v25, %v2256_v37  ;;  %v1410_v14 = vpop.permute.xlu0 %1409  ;;  %v1278_v34 = vadd.f32 %v1277_v22, %v1150_v52 }
 0x1dd   : > { %v1413_v23 = vsel %vm836_vm15, %v1410_v14, %v1412_v48  ;;  %v1414_v38 = vsel %vm836_vm15, %v1412_v48, %v1410_v14 }
 0x1de   : > { %v1417_v12 = vcombine.low %v1413_v23, %v1414_v38  ;;  %v1367_v21 = vrot.slane %v1360_v29, %v2256_v37 }
 0x1df   : > { %v1476_v18 = vpop.permute.xlu1 %1475 }
 0x1e0   : > { %v1424_v33 = vrot.slane %v1417_v12, %v2256_v37  ;;  %v1474_v32 = vpop.permute.xlu0 %1473  ;;  %v1369_v39 = vsel %vm773_vm9, %v1367_v21, 0.0 }
 0x1e1   : > { %v1477_v15 = vsel %vm902_vm4, %v1474_v32, %v1476_v18  ;;  %v1478_v44 = vsel %vm902_vm4, %v1476_v18, %v1474_v32  ;;  %v1370_v53 = vadd.f32 %v1369_v39, %v1278_v34 }
 0x1e2   : > { %v1431_v26 = vrot.slane %v1424_v33, %v2256_v37  ;;  %v1481_v7 = vcombine.low %v1477_v15, %v1478_v44 }
 0x1e4   : > { %v1488_v9 = vrot.slane %v1481_v7, %v2256_v37  ;;  %v1433_v31 = vsel %vm839_vm6, %v1431_v26, 0.0 }
 0x1e5   : > { %v1434_v11 = vadd.f32 %v1433_v31, %v1306_v43 }
 0x1e6   : > { %v1495_v57 = vrot.slane %v1488_v9, %v2256_v37 }
 0x1e8   : > { %v1497_v2 = vsel %vm905_vm10, %v1495_v57, 0.0 }
 0x1e9   : > { %v1498_v20 = vadd.f32 %v1497_v2, %v1370_v53 }
 0x1eb   : > { %v1499_v46 = vadd.f32 %v1498_v20, %v1434_v11 }
 0x1ed   : > { %v1738_v35 = vmul.f32 -1.442695, %v1499_v46 }
 0x1ef   : > { %1847 = vpow2.f32 %v1738_v35 }
 0x1f9   : > { %v1848_v24 = vpop.eup %1847 }
 0x1fa   : > { %v1503_v36 = vadd.f32 1.0, %v1848_v24 }
 0x1fc   : > { %1849 = vrcp.f32 %v1503_v36 }
 0x206   : > { %v1850_v37 = vpop.eup %1849 }
 0x207   : > { %1506 = vst.msk [vmem:[%s229_s3] sm:$0x3] %vm2247_vm1, %v1850_v37 }
 0x208   : > { %1935 = shalt.err (!%p1932_p11)
}
 0x209   : > { %s1936_s25 = scalar_lea.hbm %s3188_s12, 32  ;;  %s1940_s30 = scalar_lea.hbm %s3549_s21, 64 }
 0x20a   : > { %p1937_p7 = scmp.ne.s32.totalorder %s3188_s12, %s1936_s25  ;;  %p1941_p4 = scmp.lt.u32.totalorder %s3188_s12, %s3549_s21 }
 0x20b   : > { %p1942_p5 = scmp.lt.u32.totalorder %s1940_s30, %s1936_s25  ;;  %p1944_p0 = scmp.lt.u32.totalorder %s1936_s25, %s3188_s12 }
 0x20c   : > { %p1938_p12 = pnand %p1937_p7, %p3550_p2 }
 0x20d   : > { %p1943_p8 = por %p1942_p5, %p1941_p4 }
 0x20e   : > { %p1939_p1 = pneg %p1938_p12 }
 0x20f   : > { %p1945_p10 = por %p1944_p0, %p1943_p8 }
 0x211   : > { %p1946_p6 = pnand %p1945_p10, %p1939_p1 }
 0x213   : > { %1949 = shalt.err (!%p1946_p6)
}
 0x214   : > { %1756 = dma.vmem_to_hbm [thread:$0]  (%p3550_p2), %s3190_s13, 32, %s3188_s12, %s1508_s14  }
 0x215 PF: > { %s3551_s27 = sld [smem:[#allocation16_spill]]  ;;  %s3552_s29 = sld [smem:[#allocation22_spill]] }
 0x216   : > { %s3553_s16 = sld [smem:[#allocation21_spill]] }
 0x21b   : > { %s1534_s7 = sand.u32 1, %s3551_s27   ;;  %p3554_p9 = scmp.ne.s32.totalorder %s3552_s29, 0 }
 0x21c   : > { %p3555_p13 = scmp.ge.s32.totalorder %s3553_s16, 2  ;;  %s1535_s18 = scalar_lea.sflag [#allocation6], %s1534_s7 }
 0x21e   : > { %p1770_p3 = pnand %p3555_p13, %p3554_p9 }
 0x220   : > { %1987 = dma.done.wait (!%p1770_p3), %s1535_s18, 32  }
 0x221   : > { %1989 = vsyncadd (!%p1770_p3), %s1535_s18, 4294967264  ;;  %s21_s17 = sadd.s32 1, %s3553_s16   ;;  %s3556_s12 = sld [smem:[#allocation17_spill]] }
 0x222   : > { %p18_p11 = scmp.ge.s32.totalorder %s21_s17, 4   ;;  %s3557_s13 = sld [smem:[#allocation18_spill]] }
 0x223   : > { %s3558_s14 = sld [smem:[#allocation25_spill]]  ;;  %s3559_s15 = sld [smem:[#allocation20_spill]] }
 0x224   : > { %s3560_s16 = sld [smem:[#allocation23_spill]]  ;;  %20 = sbr.rel (!%p18_p11) target bundleno = 13 (0xd), region = 96 }
 0x22b   :  { %1540 = vsyncpa [#allocation5], 1 }
 0x22c   :  { %1542 = vsyncpa [#allocation5 + $0x1], 1 }
 0x22d   :  { %1543 = vsyncpa [#allocation10], 1 }
 0x22e   :  { %1545 = vsyncpa [#allocation10 + $0x1], 1 }
 0x22f   :  { %1546 = vsyncpa [#allocation6], 1 }
 0x230   :  { %1548 = vsyncpa [#allocation6 + $0x1], 1 }
 0x231   :  { %1549 = vsyncpa [#allocation7], 1 }
 0x232   :  { %1551 = vsyncpa [#allocation7 + $0x1], 1 }

</bundles_post_ra>
